<compile_context>
chip_gen: v7x
topology: tpu7x:2x2x1
jax: 0.10.0
libtpu: 0.0.40
codegen_flags: <defaults>
</compile_context>

<pallas_src>
import jax
import jax.numpy as jnp
from jax.experimental import pallas as pl
from jax.experimental.pallas import tpu as pltpu


def _round_up(x, m):
    return (x + m - 1) // m * m


# ---------------------------------------------------------------------------
# Pallas kernels
# ---------------------------------------------------------------------------

def _conv_pool_kernel(p_ref, w_ref, b_ref, o_ref):
    """Fused conv-as-GEMM + bias + 2x2 maxpool + ReLU.

    p_ref: (4, bm, K)  four 2x2-window taps of the im2col patch rows (bf16)
    w_ref: (K, Co)     resident weights (bf16)
    b_ref: (1, Co)     bias (f32)
    o_ref: (bm, Co)    pooled + ReLU'ed activations
    """
    w = w_ref[...]
    y0 = jnp.dot(p_ref[0], w, preferred_element_type=jnp.float32)
    y1 = jnp.dot(p_ref[1], w, preferred_element_type=jnp.float32)
    y2 = jnp.dot(p_ref[2], w, preferred_element_type=jnp.float32)
    y3 = jnp.dot(p_ref[3], w, preferred_element_type=jnp.float32)
    # max over the 4 window taps; per-channel bias commutes with the max,
    # and relu(maxpool(x)) == maxpool(relu(x)).
    y = jnp.maximum(jnp.maximum(y0, y1), jnp.maximum(y2, y3))
    y = y + b_ref[...]
    o_ref[...] = jnp.maximum(y, 0.0).astype(o_ref.dtype)


def _mlp_head_kernel(x_ref, w1_ref, b1_ref, w2_ref, b2_ref, o_ref):
    """Fused fc1 + ReLU + (dropout = identity in eval) + fc2 + log_softmax."""
    h = jnp.dot(x_ref[...], w1_ref[...], preferred_element_type=jnp.float32)
    h = jnp.maximum(h + b1_ref[...], 0.0)
    # TODO(synk): training-mode dropout (p=0.5 PRNG mask) not implemented.
    logits = jnp.dot(h.astype(w2_ref.dtype), w2_ref[...],
                     preferred_element_type=jnp.float32) + b2_ref[...]
    m = jnp.max(logits, axis=-1, keepdims=True)
    s = logits - m
    lse = jnp.log(jnp.sum(jnp.exp(s), axis=-1, keepdims=True))
    o_ref[...] = (s - lse).astype(o_ref.dtype)


_COMPILER_PARAMS = pltpu.CompilerParams(
    dimension_semantics=("parallel",),       # v7x: split row grid across 2 TCs
    vmem_limit_bytes=32 * 1024 * 1024,       # safe on v5e/v6e (128M) and v7x (64M)
)


# ---------------------------------------------------------------------------
# pallas_call wrappers (gridded over the row dimension)
# ---------------------------------------------------------------------------

def conv_pool(p, w, b, *, out_dtype, block_m=512):
    """p: (4, M, K) tap-grouped patches, w: (K, Co), b: (1, Co) -> (M, Co)."""
    _, M, K = p.shape
    Co = w.shape[1]
    bm = min(block_m, _round_up(M, 8))
    Mp = _round_up(M, bm)
    if Mp != M:
        p = jnp.pad(p, ((0, 0), (0, Mp - M), (0, 0)))
    out = pl.pallas_call(
        _conv_pool_kernel,
        out_shape=jax.ShapeDtypeStruct((Mp, Co), out_dtype),
        grid=(Mp // bm,),
        in_specs=[
            pl.BlockSpec((4, bm, K), lambda i: (0, i, 0)),
            pl.BlockSpec((K, Co), lambda i: (0, 0)),       # resident weights
            pl.BlockSpec((1, Co), lambda i: (0, 0)),       # resident bias
        ],
        out_specs=pl.BlockSpec((bm, Co), lambda i: (i, 0)),
        compiler_params=_COMPILER_PARAMS,
    )(p, w, b)
    return out[:M]


def mlp_head(x, w1, b1, w2, b2, *, block_m=512):
    """x: (M, 320) -> log_softmax(fc2(relu(fc1(x)))) of shape (M, 10)."""
    M, K = x.shape
    bm = min(block_m, _round_up(M, 8))
    Mp = _round_up(M, bm)
    if Mp != M:
        x = jnp.pad(x, ((0, Mp - M), (0, 0)))
    out = pl.pallas_call(
        _mlp_head_kernel,
        out_shape=jax.ShapeDtypeStruct((Mp, w2.shape[1]), jnp.float32),
        grid=(Mp // bm,),
        in_specs=[
            pl.BlockSpec((bm, K), lambda i: (i, 0)),
            pl.BlockSpec(w1.shape, lambda i: (0, 0)),
            pl.BlockSpec(b1.shape, lambda i: (0, 0)),
            pl.BlockSpec(w2.shape, lambda i: (0, 0)),
            pl.BlockSpec(b2.shape, lambda i: (0, 0)),
        ],
        out_specs=pl.BlockSpec((bm, w2.shape[1]), lambda i: (i, 0)),
        compiler_params=_COMPILER_PARAMS,
    )(x, w1, b1, w2, b2)
    return out[:M]


# ---------------------------------------------------------------------------
# Host-side glue: tap-grouped im2col (data rearrangement only)
# ---------------------------------------------------------------------------

def im2col_pooled(x_nhwc, k):
    """(N, H, W, C) -> (4, N*Hp*Wp, C*k*k).

    Tap t in {0..3} = (th, tw) of the 2x2 pooling window; row m = pooled output
    position (n, hp, wp). K axis ordered (c, kh, kw) to match PyTorch's
    Conv2d weight layout (Co, Ci, kh, kw)."""
    N, H, W, C = x_nhwc.shape
    Ho, Wo = H - k + 1, W - k + 1
    Hp, Wp = Ho // 2, Wo // 2
    taps = []
    for th in range(2):
        for tw in range(2):
            cols = []
            for kh in range(k):
                for kw in range(k):
                    sl = x_nhwc[:, th + kh: th + kh + 2 * Hp: 2,
                                   tw + kw: tw + kw + 2 * Wp: 2, :]
                    cols.append(sl)                          # (N, Hp, Wp, C)
            pt = jnp.stack(cols, axis=-1)                    # (N, Hp, Wp, C, k*k)
            taps.append(pt.reshape(N * Hp * Wp, C * k * k))
    return jnp.stack(taps, axis=0)                           # (4, M, K)


# ---------------------------------------------------------------------------
# Parameters
# ---------------------------------------------------------------------------

def init_params(key):
    """PyTorch-layout parameters (as nn.Conv2d / nn.Linear store them)."""
    ks = jax.random.split(key, 8)

    def u(k, shape, fan_in):
        bound = 1.0 / jnp.sqrt(fan_in)
        return jax.random.uniform(k, shape, jnp.float32, -bound, bound)

    return {
        "conv1_w": u(ks[0], (10, 1, 5, 5), 1 * 5 * 5),
        "conv1_b": u(ks[1], (10,), 1 * 5 * 5),
        "conv2_w": u(ks[2], (20, 10, 5, 5), 10 * 5 * 5),
        "conv2_b": u(ks[3], (20,), 10 * 5 * 5),
        "fc1_w":   u(ks[4], (50, 320), 320),
        "fc1_b":   u(ks[5], (50,), 320),
        "fc2_w":   u(ks[6], (10, 50), 50),
        "fc2_b":   u(ks[7], (10,), 50),
    }


_K1_PAD = 32    # conv1 K = 1*5*5  = 25  -> 32
_K2_PAD = 256   # conv2 K = 10*5*5 = 250 -> 256


def prepare_params(params):
    """One-time re-layout outside the forward: (K, Co) MXU-friendly, bf16,
    zero-padded K (so no per-call transpose/reshape of traced weights)."""
    w1 = params["conv1_w"].reshape(10, 25).T                          # (25, 10)
    w1 = jnp.pad(w1, ((0, _K1_PAD - 25), (0, 0))).astype(jnp.bfloat16)
    w2 = params["conv2_w"].reshape(20, 250).T                         # (250, 20)
    w2 = jnp.pad(w2, ((0, _K2_PAD - 250), (0, 0))).astype(jnp.bfloat16)
    return {
        "conv1_w": w1,
        "conv1_b": params["conv1_b"][None, :].astype(jnp.float32),
        "conv2_w": w2,
        "conv2_b": params["conv2_b"][None, :].astype(jnp.float32),
        "fc1_w":   params["fc1_w"].T.astype(jnp.bfloat16),            # (320, 50)
        "fc1_b":   params["fc1_b"][None, :].astype(jnp.float32),
        "fc2_w":   params["fc2_w"].T.astype(jnp.bfloat16),            # (50, 10)
        "fc2_b":   params["fc2_b"][None, :].astype(jnp.float32),
    }


# ---------------------------------------------------------------------------
# Full forward pass
# ---------------------------------------------------------------------------

@jax.jit
def net_forward(x_nchw, kp):
    N = x_nchw.shape[0]
    x = jnp.transpose(x_nchw, (0, 2, 3, 1)).astype(jnp.bfloat16)   # NHWC (N,28,28,1)

    # conv1 (1->10, k5) + bias + maxpool2 + relu : one fused gridded GEMM kernel
    p1 = im2col_pooled(x, 5)                                        # (4, N*144, 25)
    p1 = jnp.pad(p1, ((0, 0), (0, 0), (0, _K1_PAD - p1.shape[-1])))
    y1 = conv_pool(p1, kp["conv1_w"], kp["conv1_b"], out_dtype=jnp.bfloat16)
    y1 = y1.reshape(N, 12, 12, 10)

    # conv2 (10->20, k5); Dropout2d is identity in eval; + bias + maxpool2 + relu
    p2 = im2col_pooled(y1, 5)                                       # (4, N*16, 250)
    p2 = jnp.pad(p2, ((0, 0), (0, 0), (0, _K2_PAD - p2.shape[-1])))
    y2 = conv_pool(p2, kp["conv2_w"], kp["conv2_b"], out_dtype=jnp.bfloat16)
    y2 = y2.reshape(N, 4, 4, 20)

    # flatten in PyTorch NCHW (channel, h, w) order -> (N, 320), matching x.view(-1, 320)
    flat = jnp.transpose(y2, (0, 3, 1, 2)).reshape(N, 320)

    # fc1 + relu + (dropout identity) + fc2 + log_softmax, fused in one kernel
    return mlp_head(flat, kp["fc1_w"], kp["fc1_b"], kp["fc2_w"], kp["fc2_b"])


if __name__ == "__main__":
    key = jax.random.PRNGKey(0)
    k_x, k_p = jax.random.split(key)
    # MNIST-shaped input: batch=2, 1 channel, 28x28 (required by the 320-dim view).
    x = jax.random.normal(k_x, (2, 1, 28, 28), dtype=jnp.float32)
    params = init_params(k_p)
    kparams = prepare_params(params)      # one-time weight re-layout (not per call)

    out = net_forward(x, kparams)
    out = jax.block_until_ready(out)

    assert out.shape == (2, 10)
    # log_softmax rows must (approximately) sum to 1 in prob space
    assert bool(jnp.allclose(jnp.sum(jnp.exp(out), axis=-1), 1.0, atol=1e-3))
    print("KERNEL_OK")
</pallas_src>

<mosaic_0001>
module attributes {stable_mosaic.version = 11 : i64} {
  func.func @_conv_pool_kernel(%arg0: i32, %arg1: memref<4x288x32xbf16, #tpu.memory_space<vmem>>, %arg2: memref<32x10xbf16, #tpu.memory_space<vmem>>, %arg3: memref<1x10xf32, #tpu.memory_space<vmem>>, %arg4: memref<288x10xbf16, #tpu.memory_space<vmem>>) attributes {dimension_semantics = [#tpu.dimension_semantics<parallel>], iteration_bounds = array<i64: 1>, scalar_prefetch = 0 : i64, scratch_operands = 0 : i64, tpu.core_type = #tpu.core_type<tc>, window_params = [{transform_indices = @transform_0, window_bounds = array<i64: 4, 288, 32>}, {pipeline_mode = #tpu.pipeline_mode<synchronous>, transform_indices = @transform_1, window_bounds = array<i64: 32, 10>}, {pipeline_mode = #tpu.pipeline_mode<synchronous>, transform_indices = @transform_2, window_bounds = array<i64: 1, 10>}, {transform_indices = @transform_3, window_bounds = array<i64: 288, 10>}]} {
    %c0 = arith.constant 0 : index
    %c0_0 = arith.constant 0 : index
    %0 = vector.load %arg2[%c0, %c0_0] : memref<32x10xbf16, #tpu.memory_space<vmem>>, vector<32x10xbf16>
    %c0_1 = arith.constant 0 : index
    %c0_2 = arith.constant 0 : index
    %c0_3 = arith.constant 0 : index
    %1 = vector.load %arg1[%c0_1, %c0_2, %c0_3] : memref<4x288x32xbf16, #tpu.memory_space<vmem>>, vector<1x288x32xbf16>
    %2 = vector.shape_cast %1 : vector<1x288x32xbf16> to vector<288x32xbf16>
    %cst = arith.constant dense<0.000000e+00> : vector<288x10xf32>
    %3 = tpu.matmul %2, %0, %cst {dimension_numbers = #tpu.dot_dimension_numbers<[1], [0], [0], [1], [0, 0, 1, 1], [], []>} : vector<288x32xbf16>, vector<32x10xbf16>, vector<288x10xf32> -> vector<288x10xf32>
    %c1 = arith.constant 1 : index
    %c0_4 = arith.constant 0 : index
    %c0_5 = arith.constant 0 : index
    %4 = vector.load %arg1[%c1, %c0_4, %c0_5] : memref<4x288x32xbf16, #tpu.memory_space<vmem>>, vector<1x288x32xbf16>
    %5 = vector.shape_cast %4 : vector<1x288x32xbf16> to vector<288x32xbf16>
    %cst_6 = arith.constant dense<0.000000e+00> : vector<288x10xf32>
    %6 = tpu.matmul %5, %0, %cst_6 {dimension_numbers = #tpu.dot_dimension_numbers<[1], [0], [0], [1], [0, 0, 1, 1], [], []>} : vector<288x32xbf16>, vector<32x10xbf16>, vector<288x10xf32> -> vector<288x10xf32>
    %c2 = arith.constant 2 : index
    %c0_7 = arith.constant 0 : index
    %c0_8 = arith.constant 0 : index
    %7 = vector.load %arg1[%c2, %c0_7, %c0_8] : memref<4x288x32xbf16, #tpu.memory_space<vmem>>, vector<1x288x32xbf16>
    %8 = vector.shape_cast %7 : vector<1x288x32xbf16> to vector<288x32xbf16>
    %cst_9 = arith.constant dense<0.000000e+00> : vector<288x10xf32>
    %9 = tpu.matmul %8, %0, %cst_9 {dimension_numbers = #tpu.dot_dimension_numbers<[1], [0], [0], [1], [0, 0, 1, 1], [], []>} : vector<288x32xbf16>, vector<32x10xbf16>, vector<288x10xf32> -> vector<288x10xf32>
    %c3 = arith.constant 3 : index
    %c0_10 = arith.constant 0 : index
    %c0_11 = arith.constant 0 : index
    %10 = vector.load %arg1[%c3, %c0_10, %c0_11] : memref<4x288x32xbf16, #tpu.memory_space<vmem>>, vector<1x288x32xbf16>
    %11 = vector.shape_cast %10 : vector<1x288x32xbf16> to vector<288x32xbf16>
    %cst_12 = arith.constant dense<0.000000e+00> : vector<288x10xf32>
    %12 = tpu.matmul %11, %0, %cst_12 {dimension_numbers = #tpu.dot_dimension_numbers<[1], [0], [0], [1], [0, 0, 1, 1], [], []>} : vector<288x32xbf16>, vector<32x10xbf16>, vector<288x10xf32> -> vector<288x10xf32>
    %13 = arith.maximumf %3, %6 : vector<288x10xf32>
    %14 = arith.maximumf %9, %12 : vector<288x10xf32>
    %15 = arith.maximumf %13, %14 : vector<288x10xf32>
    %c0_13 = arith.constant 0 : index
    %c0_14 = arith.constant 0 : index
    %16 = vector.load %arg3[%c0_13, %c0_14] : memref<1x10xf32, #tpu.memory_space<vmem>>, vector<1x10xf32>
    %17 = vector.broadcast %16 : vector<1x10xf32> to vector<288x10xf32>
    %18 = arith.addf %15, %17 : vector<288x10xf32>
    %cst_15 = arith.constant 0.000000e+00 : f32
    %19 = vector.broadcast %cst_15 : f32 to vector<288x10xf32>
    %20 = arith.maximumf %18, %19 : vector<288x10xf32>
    %21 = arith.truncf %20 : vector<288x10xf32> to vector<288x10xbf16>
    %c0_16 = arith.constant 0 : index
    %c0_17 = arith.constant 0 : index
    %22 = vector.load %arg4[%c0_16, %c0_17] : memref<288x10xbf16, #tpu.memory_space<vmem>>, vector<288x10xbf16>
    tpu.vector_store %arg4[%c0_16, %c0_17], %21 {strides = array<i32>} : memref<288x10xbf16, #tpu.memory_space<vmem>>, vector<288x10xbf16>,
    return
  }
  func.func @transform_0(%arg0: i32) -> (i32, i32, i32) {
    %c0_i32 = arith.constant 0 : i32
    %c0_i32_0 = arith.constant 0 : i32
    %c0_i32_1 = arith.constant 0 : i32
    return %c0_i32, %arg0, %c0_i32_0 : i32, i32, i32
  }
  func.func @transform_1(%arg0: i32) -> (i32, i32) {
    %c0_i32 = arith.constant 0 : i32
    %c0_i32_0 = arith.constant 0 : i32
    %c0_i32_1 = arith.constant 0 : i32
    return %c0_i32, %c0_i32_0 : i32, i32
  }
  func.func @transform_2(%arg0: i32) -> (i32, i32) {
    %c0_i32 = arith.constant 0 : i32
    %c0_i32_0 = arith.constant 0 : i32
    %c0_i32_1 = arith.constant 0 : i32
    return %c0_i32, %c0_i32_0 : i32, i32
  }
  func.func @transform_3(%arg0: i32) -> (i32, i32) {
    %c0_i32 = arith.constant 0 : i32
    %c0_i32_0 = arith.constant 0 : i32
    return %arg0, %c0_i32 : i32, i32
  }
}

module attributes {stable_mosaic.version = 11 : i64} {
  func.func @_conv_pool_kernel(%arg0: i32, %arg1: memref<4x32x256xbf16, #tpu.memory_space<vmem>>, %arg2: memref<256x20xbf16, #tpu.memory_space<vmem>>, %arg3: memref<1x20xf32, #tpu.memory_space<vmem>>, %arg4: memref<32x20xbf16, #tpu.memory_space<vmem>>) attributes {dimension_semantics = [#tpu.dimension_semantics<parallel>], iteration_bounds = array<i64: 1>, scalar_prefetch = 0 : i64, scratch_operands = 0 : i64, tpu.core_type = #tpu.core_type<tc>, window_params = [{transform_indices = @transform_0, window_bounds = array<i64: 4, 32, 256>}, {pipeline_mode = #tpu.pipeline_mode<synchronous>, transform_indices = @transform_1, window_bounds = array<i64: 256, 20>}, {pipeline_mode = #tpu.pipeline_mode<synchronous>, transform_indices = @transform_2, window_bounds = array<i64: 1, 20>}, {transform_indices = @transform_3, window_bounds = array<i64: 32, 20>}]} {
    %c0 = arith.constant 0 : index
    %c0_0 = arith.constant 0 : index
    %0 = vector.load %arg2[%c0, %c0_0] : memref<256x20xbf16, #tpu.memory_space<vmem>>, vector<256x20xbf16>
    %c0_1 = arith.constant 0 : index
    %c0_2 = arith.constant 0 : index
    %c0_3 = arith.constant 0 : index
    %1 = vector.load %arg1[%c0_1, %c0_2, %c0_3] : memref<4x32x256xbf16, #tpu.memory_space<vmem>>, vector<1x32x256xbf16>
    %2 = vector.shape_cast %1 : vector<1x32x256xbf16> to vector<32x256xbf16>
    %cst = arith.constant dense<0.000000e+00> : vector<32x20xf32>
    %3 = tpu.matmul %2, %0, %cst {dimension_numbers = #tpu.dot_dimension_numbers<[1], [0], [0], [1], [0, 0, 1, 1], [], []>} : vector<32x256xbf16>, vector<256x20xbf16>, vector<32x20xf32> -> vector<32x20xf32>
    %c1 = arith.constant 1 : index
    %c0_4 = arith.constant 0 : index
    %c0_5 = arith.constant 0 : index
    %4 = vector.load %arg1[%c1, %c0_4, %c0_5] : memref<4x32x256xbf16, #tpu.memory_space<vmem>>, vector<1x32x256xbf16>
    %5 = vector.shape_cast %4 : vector<1x32x256xbf16> to vector<32x256xbf16>
    %cst_6 = arith.constant dense<0.000000e+00> : vector<32x20xf32>
    %6 = tpu.matmul %5, %0, %cst_6 {dimension_numbers = #tpu.dot_dimension_numbers<[1], [0], [0], [1], [0, 0, 1, 1], [], []>} : vector<32x256xbf16>, vector<256x20xbf16>, vector<32x20xf32> -> vector<32x20xf32>
    %c2 = arith.constant 2 : index
    %c0_7 = arith.constant 0 : index
    %c0_8 = arith.constant 0 : index
    %7 = vector.load %arg1[%c2, %c0_7, %c0_8] : memref<4x32x256xbf16, #tpu.memory_space<vmem>>, vector<1x32x256xbf16>
    %8 = vector.shape_cast %7 : vector<1x32x256xbf16> to vector<32x256xbf16>
    %cst_9 = arith.constant dense<0.000000e+00> : vector<32x20xf32>
    %9 = tpu.matmul %8, %0, %cst_9 {dimension_numbers = #tpu.dot_dimension_numbers<[1], [0], [0], [1], [0, 0, 1, 1], [], []>} : vector<32x256xbf16>, vector<256x20xbf16>, vector<32x20xf32> -> vector<32x20xf32>
    %c3 = arith.constant 3 : index
    %c0_10 = arith.constant 0 : index
    %c0_11 = arith.constant 0 : index
    %10 = vector.load %arg1[%c3, %c0_10, %c0_11] : memref<4x32x256xbf16, #tpu.memory_space<vmem>>, vector<1x32x256xbf16>
    %11 = vector.shape_cast %10 : vector<1x32x256xbf16> to vector<32x256xbf16>
    %cst_12 = arith.constant dense<0.000000e+00> : vector<32x20xf32>
    %12 = tpu.matmul %11, %0, %cst_12 {dimension_numbers = #tpu.dot_dimension_numbers<[1], [0], [0], [1], [0, 0, 1, 1], [], []>} : vector<32x256xbf16>, vector<256x20xbf16>, vector<32x20xf32> -> vector<32x20xf32>
    %13 = arith.maximumf %3, %6 : vector<32x20xf32>
    %14 = arith.maximumf %9, %12 : vector<32x20xf32>
    %15 = arith.maximumf %13, %14 : vector<32x20xf32>
    %c0_13 = arith.constant 0 : index
    %c0_14 = arith.constant 0 : index
    %16 = vector.load %arg3[%c0_13, %c0_14] : memref<1x20xf32, #tpu.memory_space<vmem>>, vector<1x20xf32>
    %17 = vector.broadcast %16 : vector<1x20xf32> to vector<32x20xf32>
    %18 = arith.addf %15, %17 : vector<32x20xf32>
    %cst_15 = arith.constant 0.000000e+00 : f32
    %19 = vector.broadcast %cst_15 : f32 to vector<32x20xf32>
    %20 = arith.maximumf %18, %19 : vector<32x20xf32>
    %21 = arith.truncf %20 : vector<32x20xf32> to vector<32x20xbf16>
    %c0_16 = arith.constant 0 : index
    %c0_17 = arith.constant 0 : index
    %22 = vector.load %arg4[%c0_16, %c0_17] : memref<32x20xbf16, #tpu.memory_space<vmem>>, vector<32x20xbf16>
    tpu.vector_store %arg4[%c0_16, %c0_17], %21 {strides = array<i32>} : memref<32x20xbf16, #tpu.memory_space<vmem>>, vector<32x20xbf16>,
    return
  }
  func.func @transform_0(%arg0: i32) -> (i32, i32, i32) {
    %c0_i32 = arith.constant 0 : i32
    %c0_i32_0 = arith.constant 0 : i32
    %c0_i32_1 = arith.constant 0 : i32
    return %c0_i32, %arg0, %c0_i32_0 : i32, i32, i32
  }
  func.func @transform_1(%arg0: i32) -> (i32, i32) {
    %c0_i32 = arith.constant 0 : i32
    %c0_i32_0 = arith.constant 0 : i32
    %c0_i32_1 = arith.constant 0 : i32
    return %c0_i32, %c0_i32_0 : i32, i32
  }
  func.func @transform_2(%arg0: i32) -> (i32, i32) {
    %c0_i32 = arith.constant 0 : i32
    %c0_i32_0 = arith.constant 0 : i32
    %c0_i32_1 = arith.constant 0 : i32
    return %c0_i32, %c0_i32_0 : i32, i32
  }
  func.func @transform_3(%arg0: i32) -> (i32, i32) {
    %c0_i32 = arith.constant 0 : i32
    %c0_i32_0 = arith.constant 0 : i32
    return %arg0, %c0_i32 : i32, i32
  }
}

module attributes {stable_mosaic.version = 11 : i64} {
  func.func @_mlp_head_kernel(%arg0: i32, %arg1: memref<8x320xbf16, #tpu.memory_space<vmem>>, %arg2: memref<320x50xbf16, #tpu.memory_space<vmem>>, %arg3: memref<1x50xf32, #tpu.memory_space<vmem>>, %arg4: memref<50x10xbf16, #tpu.memory_space<vmem>>, %arg5: memref<1x10xf32, #tpu.memory_space<vmem>>, %arg6: memref<8x10xf32, #tpu.memory_space<vmem>>) attributes {dimension_semantics = [#tpu.dimension_semantics<parallel>], iteration_bounds = array<i64: 1>, scalar_prefetch = 0 : i64, scratch_operands = 0 : i64, tpu.core_type = #tpu.core_type<tc>, window_params = [{transform_indices = @transform_0, window_bounds = array<i64: 8, 320>}, {pipeline_mode = #tpu.pipeline_mode<synchronous>, transform_indices = @transform_1, window_bounds = array<i64: 320, 50>}, {pipeline_mode = #tpu.pipeline_mode<synchronous>, transform_indices = @transform_2, window_bounds = array<i64: 1, 50>}, {pipeline_mode = #tpu.pipeline_mode<synchronous>, transform_indices = @transform_3, window_bounds = array<i64: 50, 10>}, {pipeline_mode = #tpu.pipeline_mode<synchronous>, transform_indices = @transform_4, window_bounds = array<i64: 1, 10>}, {transform_indices = @transform_5, window_bounds = array<i64: 8, 10>}]} {
    %c0 = arith.constant 0 : index
    %c0_0 = arith.constant 0 : index
    %0 = vector.load %arg1[%c0, %c0_0] : memref<8x320xbf16, #tpu.memory_space<vmem>>, vector<8x320xbf16>
    %c0_1 = arith.constant 0 : index
    %c0_2 = arith.constant 0 : index
    %1 = vector.load %arg2[%c0_1, %c0_2] : memref<320x50xbf16, #tpu.memory_space<vmem>>, vector<320x50xbf16>
    %cst = arith.constant dense<0.000000e+00> : vector<8x50xf32>
    %2 = tpu.matmul %0, %1, %cst {dimension_numbers = #tpu.dot_dimension_numbers<[1], [0], [0], [1], [0, 0, 1, 1], [], []>} : vector<8x320xbf16>, vector<320x50xbf16>, vector<8x50xf32> -> vector<8x50xf32>
    %c0_3 = arith.constant 0 : index
    %c0_4 = arith.constant 0 : index
    %3 = vector.load %arg3[%c0_3, %c0_4] : memref<1x50xf32, #tpu.memory_space<vmem>>, vector<1x50xf32>
    %4 = vector.broadcast %3 : vector<1x50xf32> to vector<8x50xf32>
    %5 = arith.addf %2, %4 : vector<8x50xf32>
    %cst_5 = arith.constant 0.000000e+00 : f32
    %6 = vector.broadcast %cst_5 : f32 to vector<8x50xf32>
    %7 = arith.maximumf %5, %6 : vector<8x50xf32>
    %8 = arith.truncf %7 : vector<8x50xf32> to vector<8x50xbf16>
    %c0_6 = arith.constant 0 : index
    %c0_7 = arith.constant 0 : index
    %9 = vector.load %arg4[%c0_6, %c0_7] : memref<50x10xbf16, #tpu.memory_space<vmem>>, vector<50x10xbf16>
    %cst_8 = arith.constant dense<0.000000e+00> : vector<8x10xf32>
    %10 = tpu.matmul %8, %9, %cst_8 {dimension_numbers = #tpu.dot_dimension_numbers<[1], [0], [0], [1], [0, 0, 1, 1], [], []>} : vector<8x50xbf16>, vector<50x10xbf16>, vector<8x10xf32> -> vector<8x10xf32>
    %c0_9 = arith.constant 0 : index
    %c0_10 = arith.constant 0 : index
    %11 = vector.load %arg5[%c0_9, %c0_10] : memref<1x10xf32, #tpu.memory_space<vmem>>, vector<1x10xf32>
    %12 = vector.broadcast %11 : vector<1x10xf32> to vector<8x10xf32>
    %13 = arith.addf %10, %12 : vector<8x10xf32>
    %cst_11 = arith.constant dense<0xFF800000> : vector<8xf32>
    %14 = vector.multi_reduction <maximumf>, %13, %cst_11 [1] : vector<8x10xf32> to vector<8xf32>
    %15 = vector.shape_cast %14 : vector<8xf32> to vector<8x1xf32>
    %16 = vector.broadcast %15 : vector<8x1xf32> to vector<8x10xf32>
    %17 = arith.subf %13, %16 : vector<8x10xf32>
    %18 = math.exp %17 : vector<8x10xf32>
    %cst_12 = arith.constant dense<0.000000e+00> : vector<8xf32>
    %19 = vector.multi_reduction <add>, %18, %cst_12 [1] : vector<8x10xf32> to vector<8xf32>
    %20 = vector.shape_cast %19 : vector<8xf32> to vector<8x1xf32>
    %21 = math.log %20 : vector<8x1xf32>
    %22 = vector.broadcast %21 : vector<8x1xf32> to vector<8x10xf32>
    %23 = arith.subf %17, %22 : vector<8x10xf32>
    %c0_13 = arith.constant 0 : index
    %c0_14 = arith.constant 0 : index
    %24 = vector.load %arg6[%c0_13, %c0_14] : memref<8x10xf32, #tpu.memory_space<vmem>>, vector<8x10xf32>
    tpu.vector_store %arg6[%c0_13, %c0_14], %23 {strides = array<i32>} : memref<8x10xf32, #tpu.memory_space<vmem>>, vector<8x10xf32>,
    return
  }
  func.func @transform_0(%arg0: i32) -> (i32, i32) {
    %c0_i32 = arith.constant 0 : i32
    %c0_i32_0 = arith.constant 0 : i32
    return %arg0, %c0_i32 : i32, i32
  }
  func.func @transform_1(%arg0: i32) -> (i32, i32) {
    %c0_i32 = arith.constant 0 : i32
    %c0_i32_0 = arith.constant 0 : i32
    %c0_i32_1 = arith.constant 0 : i32
    return %c0_i32, %c0_i32_0 : i32, i32
  }
  func.func @transform_2(%arg0: i32) -> (i32, i32) {
    %c0_i32 = arith.constant 0 : i32
    %c0_i32_0 = arith.constant 0 : i32
    %c0_i32_1 = arith.constant 0 : i32
    return %c0_i32, %c0_i32_0 : i32, i32
  }
  func.func @transform_3(%arg0: i32) -> (i32, i32) {
    %c0_i32 = arith.constant 0 : i32
    %c0_i32_0 = arith.constant 0 : i32
    %c0_i32_1 = arith.constant 0 : i32
    return %c0_i32, %c0_i32_0 : i32, i32
  }
  func.func @transform_4(%arg0: i32) -> (i32, i32) {
    %c0_i32 = arith.constant 0 : i32
    %c0_i32_0 = arith.constant 0 : i32
    %c0_i32_1 = arith.constant 0 : i32
    return %c0_i32, %c0_i32_0 : i32, i32
  }
  func.func @transform_5(%arg0: i32) -> (i32, i32) {
    %c0_i32 = arith.constant 0 : i32
    %c0_i32_0 = arith.constant 0 : i32
    return %arg0, %c0_i32 : i32, i32
  }
}

</mosaic_0001>

<bundles_post_ra>
// kernel: net_forward.3
= control target key start
LH: loop header
LB: loop body
LE: loop exit
PB: predicated region body
PF: predicated region fallthrough
CT: control target
= control target key end

     0   :  { %vm157_vm0 = vcmask 261120   ;;  %vm1794_vm1 = vcmask 76800   ;;  %s3299_s1 = inlined_call_operand.vmem [shape: bf16[32,10], index: 1, kind: input, shape index: {}]   ;;  %s3300_s0 = inlined_call_operand.vmem [shape: bf16[4,288,32], index: 0, kind: input, shape index: {}]   ;;  %s3301_s2 = inlined_call_operand.vmem [shape: f32[1,10], index: 2, kind: input, shape index: {}]   ;;  %s3302_s3 = inlined_call_operand.vmem [shape: bf16[288,10], index: 3, kind: output, shape index: {}]  }
   0x1   :  { %v2402_v0 = vld [vmem:[%s3299_s1] sm:$0xff]   ;;  %v2403_v1 = vld [vmem:[%s3299_s1 + $0x8] sm:$0xff]   ;;  %v2405_v3 = vld [vmem:[%s3300_s0 + $0x90] sm:$0xff]  }
   0x2   :  { %2242 = vmatprep.subr.bf16.mxu0 %v2402_v0  ;;  %2282 = vmatprep.subr.bf16.mxu1 %v2402_v0  ;;  %v2404_v2 = vld [vmem:[%s3300_s0] sm:$0xff]   ;;  %v2406_v4 = vld [vmem:[%s3300_s0 + $0x8] sm:$0xff]   ;;  %v2407_v5 = vld [vmem:[%s3300_s0 + $0x98] sm:$0xff]  }
   0x3   :  { %2243 = vmatpush3.bf16.msra.mxu0 %v2402_v0  ;;  %2283 = vmatpush3.bf16.msra.mxu1 %v2402_v0  ;;  %v2408_v6 = vld [vmem:[%s3300_s0 + $0x10] sm:$0xff]   ;;  %v2409_v7 = vld [vmem:[%s3300_s0 + $0xa0] sm:$0xff]   ;;  %v2410_v8 = vld [vmem:[%s3300_s0 + $0x18] sm:$0xff]  }
   0x4   :  { %2244 = vmatprep.subr.bf16.mxu0 %v2403_v1  ;;  %2284 = vmatprep.subr.bf16.mxu1 %v2403_v1  ;;  %v2411_v9 = vld [vmem:[%s3300_s0 + $0xa8] sm:$0xff]   ;;  %v2412_v10 = vld [vmem:[%s3300_s0 + $0x20] sm:$0xff]   ;;  %v2413_v11 = vld [vmem:[%s3300_s0 + $0xb0] sm:$0xff]  }
   0x5   :  { %2246 = vmatprep.mubr.msk.bf16.mxu0 %vm157_vm0, %v2404_v2  ;;  %2286 = vmatprep.mubr.msk.bf16.mxu1 %vm157_vm0, %v2405_v3  ;;  %v2414_v12 = vld [vmem:[%s3300_s0 + $0x28] sm:$0xff]   ;;  %v2415_v13 = vld [vmem:[%s3300_s0 + $0xb8] sm:$0xff]   ;;  %v2416_v14 = vld [vmem:[%s3300_s0 + $0x30] sm:$0xff]  }
   0x6   :  { %v2417_v15 = vld [vmem:[%s3300_s0 + $0xc0] sm:$0xff]   ;;  %v2418_v16 = vld [vmem:[%s3300_s0 + $0x38] sm:$0xff]   ;;  %v2419_v17 = vld [vmem:[%s3300_s0 + $0xc8] sm:$0xff]  }
   0x7   :  { %2245 = vmatpush3.bf16.msra.mxu0 %v2403_v1  ;;  %2285 = vmatpush3.bf16.msra.mxu1 %v2403_v1  ;;  %v2420_v18 = vld [vmem:[%s3300_s0 + $0x40] sm:$0xff]   ;;  %v2421_v19 = vld [vmem:[%s3300_s0 + $0xd0] sm:$0xff]   ;;  %v2422_v20 = vld [vmem:[%s3300_s0 + $0x48] sm:$0xff]  }
   0x8   :  { %2322 = vmatprep.subr.bf16.mxu0 %v2402_v0  ;;  %2362 = vmatprep.subr.bf16.mxu1 %v2402_v0  ;;  %v2423_v21 = vld [vmem:[%s3300_s0 + $0xd8] sm:$0xff]   ;;  %v2424_v22 = vld [vmem:[%s3300_s0 + $0x50] sm:$0xff]   ;;  %v2425_v23 = vld [vmem:[%s3300_s0 + $0xe0] sm:$0xff]  }
   0x9   :  { %v2426_v24 = vld [vmem:[%s3300_s0 + $0x58] sm:$0xff]   ;;  %v2427_v25 = vld [vmem:[%s3300_s0 + $0xe8] sm:$0xff]   ;;  %v2428_v26 = vld [vmem:[%s3300_s0 + $0x60] sm:$0xff]  }
   0xa   :  { %2247 = vmatmul.mubr.msk.bf16.vlgmr.msra.gmra.mrb[0].mxu0 %vm157_vm0, %v2406_v4  ;;  %2287 = vmatmul.mubr.msk.bf16.vlgmr.msra.gmra.mrb[0].mxu1 %vm157_vm0, %v2407_v5  ;;  %v2429_v27 = vld [vmem:[%s3300_s0 + $0xf0] sm:$0xff]   ;;  %v2430_v28 = vld [vmem:[%s3300_s0 + $0x68] sm:$0xff]   ;;  %v2431_v29 = vld [vmem:[%s3300_s0 + $0xf8] sm:$0xff]  }
   0xb   :  { %2323 = vmatpush3.bf16.msra.mxu0 %v2402_v0  ;;  %2363 = vmatpush3.bf16.msra.mxu1 %v2402_v0  ;;  %v2432_v30 = vld [vmem:[%s3300_s0 + $0x70] sm:$0xff]   ;;  %v2433_v31 = vld [vmem:[%s3300_s0 + $0x100] sm:$0xff]   ;;  %v2434_v32 = vld [vmem:[%s3300_s0 + $0x78] sm:$0xff]  }
   0xc   :  { %2250 = vmatprep.mubr.msk.bf16.mxu0 %vm157_vm0, %v2408_v6  ;;  %2290 = vmatprep.mubr.msk.bf16.mxu1 %vm157_vm0, %v2409_v7  ;;  %v2435_v33 = vld [vmem:[%s3300_s0 + $0x108] sm:$0xff]   ;;  %v2436_v34 = vld [vmem:[%s3300_s0 + $0x80] sm:$0xff]   ;;  %v2437_v35 = vld [vmem:[%s3300_s0 + $0x110] sm:$0xff]  }
   0xd   :  { %2324 = vmatprep.subr.bf16.mxu0 %v2403_v1  ;;  %2364 = vmatprep.subr.bf16.mxu1 %v2403_v1  ;;  %v2438_v36 = vld [vmem:[%s3300_s0 + $0x88] sm:$0xff]   ;;  %v2439_v37 = vld [vmem:[%s3300_s0 + $0x118] sm:$0xff]   ;;  %v2440_v38 = vld [vmem:[%s3300_s0 + $0x120] sm:$0xff]  }
   0xe   :  { %v2441_v39 = vld [vmem:[%s3300_s0 + $0x1b0] sm:$0xff]   ;;  %v2442_v40 = vld [vmem:[%s3300_s0 + $0x128] sm:$0xff]   ;;  %v2443_v41 = vld [vmem:[%s3300_s0 + $0x1b8] sm:$0xff]  }
   0xf   :  { %2325 = vmatpush3.bf16.msra.mxu0 %v2403_v1  ;;  %2365 = vmatpush3.bf16.msra.mxu1 %v2403_v1  ;;  %v2444_v42 = vld [vmem:[%s3300_s0 + $0x130] sm:$0xff]   ;;  %v2445_v43 = vld [vmem:[%s3300_s0 + $0x1c0] sm:$0xff]   ;;  %v2446_v44 = vld [vmem:[%s3300_s0 + $0x138] sm:$0xff]  }
  0x10   :  { %v2447_v45 = vld [vmem:[%s3300_s0 + $0x1c8] sm:$0xff]   ;;  %v2448_v46 = vld [vmem:[%s3300_s0 + $0x140] sm:$0xff]   ;;  %v2449_v47 = vld [vmem:[%s3300_s0 + $0x1d0] sm:$0xff]  }
  0x11   :  { %v2450_v48 = vld [vmem:[%s3300_s0 + $0x148] sm:$0xff]   ;;  %v2451_v49 = vld [vmem:[%s3300_s0 + $0x1d8] sm:$0xff]   ;;  %v2452_v50 = vld [vmem:[%s3300_s0 + $0x150] sm:$0xff]  }
  0x12   :  { %2251 = vmatmul.mubr.msk.bf16.gmra.mrb[4].mxu0 %vm157_vm0, %v2410_v8  ;;  %2291 = vmatmul.mubr.msk.bf16.gmra.mrb[4].mxu1 %vm157_vm0, %v2411_v9  ;;  %v2453_v51 = vld [vmem:[%s3300_s0 + $0x1e0] sm:$0xff]   ;;  %v2454_v52 = vld [vmem:[%s3300_s0 + $0x158] sm:$0xff]   ;;  %v2455_v53 = vld [vmem:[%s3300_s0 + $0x1e8] sm:$0xff]  }
  0x13   :  { %2254 = vmatprep.mubr.msk.bf16.mxu0 %vm157_vm0, %v2412_v10  ;;  %2294 = vmatprep.mubr.msk.bf16.mxu1 %vm157_vm0, %v2413_v11  ;;  %v2456_v54 = vld [vmem:[%s3300_s0 + $0x160] sm:$0xff]   ;;  %v2457_v55 = vld [vmem:[%s3300_s0 + $0x1f0] sm:$0xff]   ;;  %v2458_v56 = vld [vmem:[%s3300_s0 + $0x168] sm:$0xff]  }
  0x14   :  { %v2459_v57 = vld [vmem:[%s3300_s0 + $0x1f8] sm:$0xff]   ;;  %v2460_v58 = vld [vmem:[%s3300_s0 + $0x170] sm:$0xff]   ;;  %v2461_v59 = vld [vmem:[%s3300_s0 + $0x200] sm:$0xff]  }
  0x15   :  { %v2462_v60 = vld [vmem:[%s3300_s0 + $0x178] sm:$0xff]   ;;  %v2463_v61 = vld [vmem:[%s3300_s0 + $0x208] sm:$0xff]   ;;  %v2464_v62 = vld [vmem:[%s3300_s0 + $0x180] sm:$0xff]  }
  0x16   :  { %v2465_v63 = vld [vmem:[%s3300_s0 + $0x210] sm:$0xff]   ;;  %v2466_v0 = vld [vmem:[%s3300_s0 + $0x188] sm:$0xff]   ;;  %v2467_v1 = vld [vmem:[%s3300_s0 + $0x218] sm:$0xff]  }
  0x17   :  { %v2468_v2 = vld [vmem:[%s3300_s0 + $0x190] sm:$0xff]   ;;  %v2469_v3 = vld [vmem:[%s3300_s0 + $0x220] sm:$0xff]   ;;  %v2470_v4 = vld [vmem:[%s3300_s0 + $0x198] sm:$0xff]  }
  0x18   :  { %v2471_v5 = vld [vmem:[%s3300_s0 + $0x228] sm:$0xff]   ;;  %v2472_v6 = vld [vmem:[%s3300_s0 + $0x1a0] sm:$0xff]   ;;  %v2473_v7 = vld [vmem:[%s3300_s0 + $0x230] sm:$0xff]  }
  0x19   :  { %v2474_v8 = vld [vmem:[%s3300_s0 + $0x1a8] sm:$0xff]   ;;  %v2475_v9 = vld [vmem:[%s3300_s0 + $0x238] sm:$0xff]  }
  0x1a   :  { %2255 = vmatmul.mubr.msk.bf16.gmra.mrb[8].mxu0 %vm157_vm0, %v2414_v12  ;;  %2295 = vmatmul.mubr.msk.bf16.gmra.mrb[8].mxu1 %vm157_vm0, %v2415_v13 }
  0x1b   :  { %2258 = vmatprep.mubr.msk.bf16.mxu0 %vm157_vm0, %v2416_v14  ;;  %2298 = vmatprep.mubr.msk.bf16.mxu1 %vm157_vm0, %v2417_v15 }
  0x22   :  { %2259 = vmatmul.mubr.msk.bf16.gmra.mrb[12].mxu0 %vm157_vm0, %v2418_v16  ;;  %2299 = vmatmul.mubr.msk.bf16.gmra.mrb[12].mxu1 %vm157_vm0, %v2419_v17 }
  0x23   :  { %2262 = vmatprep.mubr.msk.bf16.mxu0 %vm157_vm0, %v2420_v18  ;;  %2302 = vmatprep.mubr.msk.bf16.mxu1 %vm157_vm0, %v2421_v19 }
  0x2a   :  { %2263 = vmatmul.mubr.msk.bf16.gmra.mrb[16].mxu0 %vm157_vm0, %v2422_v20  ;;  %2303 = vmatmul.mubr.msk.bf16.gmra.mrb[16].mxu1 %vm157_vm0, %v2423_v21 }
  0x2b   :  { %2266 = vmatprep.mubr.msk.bf16.mxu0 %vm157_vm0, %v2424_v22  ;;  %2306 = vmatprep.mubr.msk.bf16.mxu1 %vm157_vm0, %v2425_v23 }
  0x32   :  { %2267 = vmatmul.mubr.msk.bf16.gmra.mrb[20].mxu0 %vm157_vm0, %v2426_v24  ;;  %2307 = vmatmul.mubr.msk.bf16.gmra.mrb[20].mxu1 %vm157_vm0, %v2427_v25 }
  0x33   :  { %2270 = vmatprep.mubr.msk.bf16.mxu0 %vm157_vm0, %v2428_v26  ;;  %2310 = vmatprep.mubr.msk.bf16.mxu1 %vm157_vm0, %v2429_v27 }
  0x3a   :  { %2271 = vmatmul.mubr.msk.bf16.gmra.mrb[24].mxu0 %vm157_vm0, %v2430_v28  ;;  %2311 = vmatmul.mubr.msk.bf16.gmra.mrb[24].mxu1 %vm157_vm0, %v2431_v29 }
  0x3b   :  { %2274 = vmatprep.mubr.msk.bf16.mxu0 %vm157_vm0, %v2432_v30  ;;  %2314 = vmatprep.mubr.msk.bf16.mxu1 %vm157_vm0, %v2433_v31 }
  0x42   :  { %2275 = vmatmul.mubr.msk.bf16.gmra.mrb[28].mxu0 %vm157_vm0, %v2434_v32  ;;  %2315 = vmatmul.mubr.msk.bf16.gmra.mrb[28].mxu1 %vm157_vm0, %v2435_v33 }
  0x43   :  { %2278 = vmatprep.mubr.msk.bf16.mxu0 %vm157_vm0, %v2436_v34  ;;  %2318 = vmatprep.mubr.msk.bf16.mxu1 %vm157_vm0, %v2437_v35 }
  0x4a   :  { %2279 = vmatmul.mubr.msk.bf16.gmra.mrb[32].mxu0 %vm157_vm0, %v2438_v36  ;;  %2319 = vmatmul.mubr.msk.bf16.gmra.mrb[32].mxu1 %vm157_vm0, %v2439_v37 }
  0x4b   :  { %2326 = vmatprep.mubr.msk.bf16.mxu0 %vm157_vm0, %v2440_v38  ;;  %2366 = vmatprep.mubr.msk.bf16.mxu1 %vm157_vm0, %v2441_v39 }
  0x52   :  { %2327 = vmatmul.mubr.msk.bf16.vlgmr.msra.gmra.mrb[36].mxu0 %vm157_vm0, %v2442_v40  ;;  %2367 = vmatmul.mubr.msk.bf16.vlgmr.msra.gmra.mrb[36].mxu1 %vm157_vm0, %v2443_v41 }
  0x53   :  { %2330 = vmatprep.mubr.msk.bf16.mxu0 %vm157_vm0, %v2444_v42  ;;  %2370 = vmatprep.mubr.msk.bf16.mxu1 %vm157_vm0, %v2445_v43 }
  0x5a   :  { %2331 = vmatmul.mubr.msk.bf16.gmra.mrb[40].mxu0 %vm157_vm0, %v2446_v44  ;;  %2371 = vmatmul.mubr.msk.bf16.gmra.mrb[40].mxu1 %vm157_vm0, %v2447_v45 }
  0x5b   :  { %2334 = vmatprep.mubr.msk.bf16.mxu0 %vm157_vm0, %v2448_v46  ;;  %2374 = vmatprep.mubr.msk.bf16.mxu1 %vm157_vm0, %v2449_v47 }
  0x62   :  { %2335 = vmatmul.mubr.msk.bf16.gmra.mrb[44].mxu0 %vm157_vm0, %v2450_v48  ;;  %2375 = vmatmul.mubr.msk.bf16.gmra.mrb[44].mxu1 %vm157_vm0, %v2451_v49 }
  0x63   :  { %2338 = vmatprep.mubr.msk.bf16.mxu0 %vm157_vm0, %v2452_v50  ;;  %2378 = vmatprep.mubr.msk.bf16.mxu1 %vm157_vm0, %v2453_v51 }
  0x6a   :  { %2339 = vmatmul.mubr.msk.bf16.gmra.mrb[48].mxu0 %vm157_vm0, %v2454_v52  ;;  %2379 = vmatmul.mubr.msk.bf16.gmra.mrb[48].mxu1 %vm157_vm0, %v2455_v53 }
  0x6b   :  { %2342 = vmatprep.mubr.msk.bf16.mxu0 %vm157_vm0, %v2456_v54  ;;  %2382 = vmatprep.mubr.msk.bf16.mxu1 %vm157_vm0, %v2457_v55 }
  0x72   :  { %2343 = vmatmul.mubr.msk.bf16.gmra.mrb[52].mxu0 %vm157_vm0, %v2458_v56  ;;  %2383 = vmatmul.mubr.msk.bf16.gmra.mrb[52].mxu1 %vm157_vm0, %v2459_v57 }
  0x73   :  { %2346 = vmatprep.mubr.msk.bf16.mxu0 %vm157_vm0, %v2460_v58  ;;  %2386 = vmatprep.mubr.msk.bf16.mxu1 %vm157_vm0, %v2461_v59 }
  0x7a   :  { %2347 = vmatmul.mubr.msk.bf16.gmra.mrb[56].mxu0 %vm157_vm0, %v2462_v60  ;;  %2387 = vmatmul.mubr.msk.bf16.gmra.mrb[56].mxu1 %vm157_vm0, %v2463_v61 }
  0x7b   :  { %2350 = vmatprep.mubr.msk.bf16.mxu0 %vm157_vm0, %v2464_v62  ;;  %2390 = vmatprep.mubr.msk.bf16.mxu1 %vm157_vm0, %v2465_v63 }
  0x82   :  { %2351 = vmatmul.mubr.msk.bf16.gmra.mrb[60].mxu0 %vm157_vm0, %v2466_v0  ;;  %2391 = vmatmul.mubr.msk.bf16.gmra.mrb[60].mxu1 %vm157_vm0, %v2467_v1 }
  0x83   :  { %2354 = vmatprep.mubr.msk.bf16.mxu0 %vm157_vm0, %v2468_v2  ;;  %2394 = vmatprep.mubr.msk.bf16.mxu1 %vm157_vm0, %v2469_v3  ;;  %v3009_v2 = vld [vmem:[%s3301_s2] ss:$0 sm:$0xff] }
  0x8a   :  { %2355 = vmatmul.mubr.msk.bf16.gmra.mrb[64].mxu0 %vm157_vm0, %v2470_v4  ;;  %2395 = vmatmul.mubr.msk.bf16.gmra.mrb[64].mxu1 %vm157_vm0, %v2471_v5 }
  0x8b   :  { %2358 = vmatprep.mubr.msk.bf16.mxu0 %vm157_vm0, %v2472_v6  ;;  %2398 = vmatprep.mubr.msk.bf16.mxu1 %vm157_vm0, %v2473_v7 }
  0x92   :  { %2359 = vmatmul.mubr.msk.bf16.gmra.mrb[68].mxu0 %vm157_vm0, %v2474_v8  ;;  %2399 = vmatmul.mubr.msk.bf16.gmra.mrb[68].mxu1 %vm157_vm0, %v2475_v9 }
  0xdd   :  { %v2790_v10 = vpop.f32.mrb[0].mxu0  ;;  %v2792_v11 = vpop.f32.mrb[0].mxu1 }
  0xde   :  { %v2796_v13 = vpop.f32.mrb[1].mxu0  ;;  %v2798_v14 = vpop.f32.mrb[1].mxu1 }
  0xdf   :  { %v2802_v16 = vpop.f32.mrb[2].mxu0  ;;  %v2804_v17 = vpop.f32.mrb[2].mxu1 }
  0xe0   :  { %v2808_v19 = vpop.f32.mrb[3].mxu0  ;;  %v2810_v20 = vpop.f32.mrb[3].mxu1 }
  0xe5   :  { %v2814_v22 = vpop.f32.mrb[4].mxu0  ;;  %v2816_v23 = vpop.f32.mrb[4].mxu1 }
  0xe6   :  { %v2820_v25 = vpop.f32.mrb[5].mxu0  ;;  %v2822_v26 = vpop.f32.mrb[5].mxu1 }
  0xe7   :  { %v2826_v28 = vpop.f32.mrb[6].mxu0  ;;  %v2828_v29 = vpop.f32.mrb[6].mxu1 }
  0xe8   :  { %v2832_v31 = vpop.f32.mrb[7].mxu0  ;;  %v2834_v32 = vpop.f32.mrb[7].mxu1 }
  0xed   :  { %v2838_v34 = vpop.f32.mrb[8].mxu0  ;;  %v2840_v35 = vpop.f32.mrb[8].mxu1 }
  0xee   :  { %v2844_v37 = vpop.f32.mrb[9].mxu0  ;;  %v2846_v38 = vpop.f32.mrb[9].mxu1 }
  0xef   :  { %v2850_v40 = vpop.f32.mrb[10].mxu0  ;;  %v2852_v41 = vpop.f32.mrb[10].mxu1 }
  0xf0   :  { %v2856_v43 = vpop.f32.mrb[11].mxu0  ;;  %v2858_v44 = vpop.f32.mrb[11].mxu1 }
  0xf5   :  { %v2862_v46 = vpop.f32.mrb[12].mxu0  ;;  %v2864_v47 = vpop.f32.mrb[12].mxu1 }
  0xf6   :  { %v2868_v49 = vpop.f32.mrb[13].mxu0  ;;  %v2870_v50 = vpop.f32.mrb[13].mxu1 }
  0xf7   :  { %v2874_v52 = vpop.f32.mrb[14].mxu0  ;;  %v2876_v53 = vpop.f32.mrb[14].mxu1 }
  0xf8   :  { %v2880_v55 = vpop.f32.mrb[15].mxu0  ;;  %v2882_v56 = vpop.f32.mrb[15].mxu1 }
  0xfd   :  { %v2886_v58 = vpop.f32.mrb[16].mxu0  ;;  %v2888_v59 = vpop.f32.mrb[16].mxu1 }
  0xfe   :  { %v2892_v61 = vpop.f32.mrb[17].mxu0  ;;  %v2894_v62 = vpop.f32.mrb[17].mxu1 }
  0xff   :  { %v2898_v0 = vpop.f32.mrb[18].mxu0  ;;  %v2900_v1 = vpop.f32.mrb[18].mxu1 }
 0x100   :  { %v2904_v3 = vpop.f32.mrb[19].mxu0  ;;  %v2906_v4 = vpop.f32.mrb[19].mxu1 }
 0x105   :  { %v2910_v6 = vpop.f32.mrb[20].mxu0  ;;  %v2912_v7 = vpop.f32.mrb[20].mxu1 }
 0x106   :  { %v2916_v9 = vpop.f32.mrb[21].mxu0  ;;  %v2918_v63 = vpop.f32.mrb[21].mxu1 }
 0x107   :  { %v2922_v60 = vpop.f32.mrb[22].mxu0  ;;  %v2924_v57 = vpop.f32.mrb[22].mxu1 }
 0x108   :  { %v2928_v54 = vpop.f32.mrb[23].mxu0  ;;  %v2930_v51 = vpop.f32.mrb[23].mxu1 }
 0x109   :  { %3328 = vst [vmem:[#allocation2_spill] sm:$0xff] %v2930_v51  ;;  %v3355_v51 = vmax.f32 %v2802_v16, %v2804_v17 }
 0x10d   :  { %v2934_v48 = vpop.f32.mrb[24].mxu0  ;;  %v2936_v45 = vpop.f32.mrb[24].mxu1 }
 0x10e   :  { %3329 = vst [vmem:[#allocation3_spill] sm:$0xff] %v2934_v48  ;;  %3330 = vst [vmem:[#allocation4_spill] sm:$0xff] %v2936_v45  ;;  %v2940_v42 = vpop.f32.mrb[25].mxu0  ;;  %v2942_v39 = vpop.f32.mrb[25].mxu1 }
 0x10f   :  { %3331 = vst [vmem:[#allocation5_spill] sm:$0xff] %v2940_v42  ;;  %3332 = vst [vmem:[#allocation6_spill] sm:$0xff] %v2942_v39  ;;  %v2946_v36 = vpop.f32.mrb[26].mxu0  ;;  %v2948_v33 = vpop.f32.mrb[26].mxu1 }
 0x110   :  { %3333 = vst [vmem:[#allocation7_spill] sm:$0xff] %v2946_v36  ;;  %3334 = vst [vmem:[#allocation8_spill] sm:$0xff] %v2948_v33  ;;  %v2952_v30 = vpop.f32.mrb[27].mxu0  ;;  %v2954_v27 = vpop.f32.mrb[27].mxu1 }
 0x111   :  { %3335 = vst [vmem:[#allocation9_spill] sm:$0xff] %v2952_v30  ;;  %3336 = vst [vmem:[#allocation10_spill] sm:$0xff] %v2954_v27 }
 0x115   :  { %v2958_v24 = vpop.f32.mrb[28].mxu0  ;;  %v2960_v21 = vpop.f32.mrb[28].mxu1 }
 0x116   :  { %3337 = vst [vmem:[#allocation11_spill] sm:$0xff] %v2958_v24  ;;  %3338 = vst [vmem:[#allocation12_spill] sm:$0xff] %v2960_v21  ;;  %v2964_v18 = vpop.f32.mrb[29].mxu0  ;;  %v2966_v15 = vpop.f32.mrb[29].mxu1 }
 0x117   :  { %3339 = vst [vmem:[#allocation13_spill] sm:$0xff] %v2964_v18  ;;  %3340 = vst [vmem:[#allocation14_spill] sm:$0xff] %v2966_v15  ;;  %v2970_v12 = vpop.f32.mrb[30].mxu0  ;;  %v2972_v33 = vpop.f32.mrb[30].mxu1 }
 0x118   :  { %3341 = vst [vmem:[#allocation15_spill] sm:$0xff] %v2970_v12  ;;  %3342 = vst [vmem:[#allocation16_spill] sm:$0xff] %v2972_v33  ;;  %v2976_v27 = vpop.f32.mrb[31].mxu0  ;;  %v2978_v30 = vpop.f32.mrb[31].mxu1 }
 0x119   :  { %3343 = vst [vmem:[#allocation17_spill] sm:$0xff] %v2976_v27  ;;  %3344 = vst [vmem:[#allocation18_spill] sm:$0xff] %v2978_v30 }
 0x11d   :  { %v2982_v21 = vpop.f32.mrb[32].mxu0  ;;  %v2984_v24 = vpop.f32.mrb[32].mxu1 }
 0x11e   :  { %3345 = vst [vmem:[#allocation19_spill] sm:$0xff] %v2982_v21  ;;  %3346 = vst [vmem:[#allocation20_spill] sm:$0xff] %v2984_v24  ;;  %v2988_v15 = vpop.f32.mrb[33].mxu0  ;;  %v2990_v18 = vpop.f32.mrb[33].mxu1 }
 0x11f   :  { %3347 = vst [vmem:[#allocation21_spill] sm:$0xff] %v2988_v15  ;;  %3348 = vst [vmem:[#allocation22_spill] sm:$0xff] %v2990_v18  ;;  %v2994_v33 = vpop.f32.mrb[34].mxu0  ;;  %v2996_v12 = vpop.f32.mrb[34].mxu1 }
 0x120   :  { %3349 = vst [vmem:[#allocation23_spill] sm:$0xff] %v2994_v33  ;;  %3350 = vst [vmem:[#allocation24_spill] sm:$0xff] %v2996_v12  ;;  %v3000_v30 = vpop.f32.mrb[35].mxu0  ;;  %v3002_v27 = vpop.f32.mrb[35].mxu1  ;;  %v3353_v12 = vmax.f32 %v2790_v10, %v2792_v11  ;;  %v3356_v10 = vmax.f32 %v2808_v19, %v2810_v20 }
 0x121   :  { %3351 = vst [vmem:[#allocation25_spill] sm:$0xff] %v3000_v30  ;;  %3352 = vst [vmem:[#allocation26_spill] sm:$0xff] %v3002_v27 }
 0x125   :  { %v2328_v24 = vpop.f32.mrb[36].mxu0  ;;  %v2368_v21 = vpop.f32.mrb[36].mxu1 }
 0x126   :  { %v1501_v36 = vmax.f32 %v2328_v24, %v2368_v21  ;;  %v962_v39 = vpop.f32.mrb[37].mxu0  ;;  %v1320_v42 = vpop.f32.mrb[37].mxu1  ;;  %v3354_v21 = vmax.f32 %v2796_v13, %v2798_v14 }
 0x127   :  { %v1499_v18 = vmax.f32 %v962_v39, %v1320_v42  ;;  %v2329_v15 = vpop.f32.mrb[38].mxu0  ;;  %v2369_v5 = vpop.f32.mrb[38].mxu1 }
 0x128   :  { %v1537_v33 = vmax.f32 %v3353_v12, %v1501_v36  ;;  %v1502_v45 = vmax.f32 %v2329_v15, %v2369_v5  ;;  %v965_v48 = vpop.f32.mrb[39].mxu0  ;;  %v1323_v8 = vpop.f32.mrb[39].mxu1 }
 0x129   :  { %v1535_v24 = vmax.f32 %v3354_v21, %v1499_v18  ;;  %v1500_v27 = vmax.f32 %v965_v48, %v1323_v8 }
 0x12a   :  { %v1580_v30 = vadd.f32 %v3009_v2, %v1537_v33  ;;  %v1538_v39 = vmax.f32 %v3355_v51, %v1502_v45 }
 0x12b   :  { %v1578_v42 = vadd.f32 %v3009_v2, %v1535_v24  ;;  %v1536_v11 = vmax.f32 %v3356_v10, %v1500_v27  ;;  %v3357_v27 = vmax.f32 %v2814_v22, %v2816_v23  ;;  %v3359_v23 = vmax.f32 %v2826_v28, %v2828_v29 }
 0x12c   :  { %v1616_v12 = vmax.f32 %v1580_v30, 0.0  ;;  %v1581_v15 = vadd.f32 %v3009_v2, %v1538_v39 }
 0x12d   :  { %v1614_v36 = vmax.f32 %v1578_v42, 0.0  ;;  %v1579_v13 = vadd.f32 %v3009_v2, %v1536_v11  ;;  %v2332_v14 = vpop.f32.mrb[40].mxu0  ;;  %v2372_v18 = vpop.f32.mrb[40].mxu1  ;;  %v3358_v11 = vmax.f32 %v2820_v25, %v2822_v26  ;;  %v3360_v26 = vmax.f32 %v2832_v31, %v2834_v32 }
 0x12e   :  { %v2128_v33 = vpack.c.bf16 %v1616_v12, %v1616_v12  ;;  %v1617_v48 = vmax.f32 %v1581_v15, 0.0  ;;  %v1505_v5 = vmax.f32 %v2332_v14, %v2372_v18  ;;  %v978_v16 = vpop.f32.mrb[41].mxu0  ;;  %v1336_v17 = vpop.f32.mrb[41].mxu1  ;;  %v3361_v32 = vmax.f32 %v2838_v34, %v2840_v35 }
 0x12f   :  { %v2126_v45 = vpack.c.bf16 %v1614_v36, %v1614_v36  ;;  %v1615_v51 = vmax.f32 %v1579_v13, 0.0  ;;  %v1503_v8 = vmax.f32 %v978_v16, %v1336_v17  ;;  %v2333_v21 = vpop.f32.mrb[42].mxu0  ;;  %v2373_v19 = vpop.f32.mrb[42].mxu1  ;;  %v3363_v35 = vmax.f32 %v2850_v40, %v2852_v41 }
 0x130   :  { %1797 = vst.msk [vmem:[%s3302_s3 + $0x8] sm:$0xf] %vm1794_vm1, %v2128_v33  ;;  %v2129_v20 = vpack.c.bf16 %v1617_v48, %v1617_v48  ;;  %v1541_v30 = vmax.f32 %v3357_v27, %v1505_v5  ;;  %v1506_v24 = vmax.f32 %v2333_v21, %v2373_v19  ;;  %v981_v39 = vpop.f32.mrb[43].mxu0  ;;  %v1339_v42 = vpop.f32.mrb[43].mxu1 }
 0x131   :  { %1795 = vst.msk [vmem:[%s3302_s3] sm:$0xf] %vm1794_vm1, %v2126_v45  ;;  %v2127_v10 = vpack.c.bf16 %v1615_v51, %v1615_v51  ;;  %v1539_v12 = vmax.f32 %v3358_v11, %v1503_v8  ;;  %v1504_v15 = vmax.f32 %v981_v39, %v1339_v42  ;;  %v3362_v11 = vmax.f32 %v2844_v37, %v2846_v38 }
 0x132   :  { %1798 = vst.msk [vmem:[%s3302_s3 + $0xc] sm:$0xf] %vm1794_vm1, %v2129_v20  ;;  %v1584_v22 = vadd.f32 %v3009_v2, %v1541_v30  ;;  %v1542_v36 = vmax.f32 %v3359_v23, %v1506_v24  ;;  %v3364_v38 = vmax.f32 %v2856_v43, %v2858_v44  ;;  %v3365_v44 = vmax.f32 %v2862_v46, %v2864_v47 }
 0x133   :  { %1796 = vst.msk [vmem:[%s3302_s3 + $0x4] sm:$0xf] %vm1794_vm1, %v2127_v10  ;;  %v1582_v25 = vadd.f32 %v3009_v2, %v1539_v12  ;;  %v1540_v13 = vmax.f32 %v3360_v26, %v1504_v15  ;;  %v3367_v47 = vmax.f32 %v2874_v52, %v2876_v53 }
 0x134   :  { %v1620_v14 = vmax.f32 %v1584_v22, 0.0  ;;  %v1585_v18 = vadd.f32 %v3009_v2, %v1542_v36 }
 0x135   :  { %v1618_v33 = vmax.f32 %v1582_v25, 0.0  ;;  %v1583_v48 = vadd.f32 %v3009_v2, %v1540_v13  ;;  %v2336_v5 = vpop.f32.mrb[44].mxu0  ;;  %v2376_v28 = vpop.f32.mrb[44].mxu1 }
 0x136   :  { %v2132_v29 = vpack.c.bf16 %v1620_v14, %v1620_v14  ;;  %v1621_v16 = vmax.f32 %v1585_v18, 0.0  ;;  %v1509_v17 = vmax.f32 %v2336_v5, %v2376_v28  ;;  %v994_v45 = vpop.f32.mrb[45].mxu0  ;;  %v1352_v51 = vpop.f32.mrb[45].mxu1 }
 0x137   :  { %v2130_v8 = vpack.c.bf16 %v1618_v33, %v1618_v33  ;;  %v1619_v21 = vmax.f32 %v1583_v48, 0.0  ;;  %v1507_v19 = vmax.f32 %v994_v45, %v1352_v51  ;;  %v2337_v20 = vpop.f32.mrb[46].mxu0  ;;  %v2377_v27 = vpop.f32.mrb[46].mxu1 }
 0x138   :  { %1801 = vst.msk [vmem:[%s3302_s3 + $0x18] sm:$0xf] %vm1794_vm1, %v2132_v29  ;;  %v2133_v31 = vpack.c.bf16 %v1621_v16, %v1621_v16  ;;  %v1545_v30 = vmax.f32 %v3361_v32, %v1509_v17  ;;  %v1510_v24 = vmax.f32 %v2337_v20, %v2377_v27  ;;  %v997_v39 = vpop.f32.mrb[47].mxu0  ;;  %v1355_v42 = vpop.f32.mrb[47].mxu1  ;;  %v3366_v27 = vmax.f32 %v2868_v49, %v2870_v50 }
 0x139   :  { %1799 = vst.msk [vmem:[%s3302_s3 + $0x10] sm:$0xf] %vm1794_vm1, %v2130_v8  ;;  %v2131_v10 = vpack.c.bf16 %v1619_v21, %v1619_v21  ;;  %v1543_v12 = vmax.f32 %v3362_v11, %v1507_v19  ;;  %v1508_v15 = vmax.f32 %v997_v39, %v1355_v42  ;;  %v3368_v50 = vmax.f32 %v2880_v55, %v2882_v56 }
 0x13a   :  { %1802 = vst.msk [vmem:[%s3302_s3 + $0x1c] sm:$0xf] %vm1794_vm1, %v2133_v31  ;;  %v1588_v34 = vadd.f32 %v3009_v2, %v1545_v30  ;;  %v1546_v22 = vmax.f32 %v3363_v35, %v1510_v24  ;;  %v3369_v56 = vmax.f32 %v2886_v58, %v2888_v59  ;;  %v3371_v59 = vmax.f32 %v2898_v0, %v2900_v1 }
 0x13b   :  { %1800 = vst.msk [vmem:[%s3302_s3 + $0x14] sm:$0xf] %vm1794_vm1, %v2131_v10  ;;  %v1586_v37 = vadd.f32 %v3009_v2, %v1543_v12  ;;  %v1544_v23 = vmax.f32 %v3364_v38, %v1508_v15 }
 0x13c   :  { %v1624_v36 = vmax.f32 %v1588_v34, 0.0  ;;  %v1589_v25 = vadd.f32 %v3009_v2, %v1546_v22 }
 0x13d   :  { %v1622_v26 = vmax.f32 %v1586_v37, 0.0  ;;  %v1587_v13 = vadd.f32 %v3009_v2, %v1544_v23  ;;  %v2340_v14 = vpop.f32.mrb[48].mxu0  ;;  %v2380_v40 = vpop.f32.mrb[48].mxu1 }
 0x13e   :  { %v2136_v41 = vpack.c.bf16 %v1624_v36, %v1624_v36  ;;  %v1625_v18 = vmax.f32 %v1589_v25, 0.0  ;;  %v1513_v33 = vmax.f32 %v2340_v14, %v2380_v40  ;;  %v1010_v48 = vpop.f32.mrb[49].mxu0  ;;  %v1368_v5 = vpop.f32.mrb[49].mxu1 }
 0x13f   :  { %v2134_v28 = vpack.c.bf16 %v1622_v26, %v1622_v26  ;;  %v1623_v29 = vmax.f32 %v1587_v13, 0.0  ;;  %v1511_v16 = vmax.f32 %v1010_v48, %v1368_v5  ;;  %v2341_v17 = vpop.f32.mrb[50].mxu0  ;;  %v2381_v45 = vpop.f32.mrb[50].mxu1 }
 0x140   :  { %1805 = vst.msk [vmem:[%s3302_s3 + $0x28] sm:$0xf] %vm1794_vm1, %v2136_v41  ;;  %v2137_v43 = vpack.c.bf16 %v1625_v18, %v1625_v18  ;;  %v1549_v51 = vmax.f32 %v3365_v44, %v1513_v33  ;;  %v1514_v8 = vmax.f32 %v2341_v17, %v2381_v45  ;;  %v1013_v21 = vpop.f32.mrb[51].mxu0  ;;  %v1371_v19 = vpop.f32.mrb[51].mxu1  ;;  %v3370_v18 = vmax.f32 %v2892_v61, %v2894_v62 }
 0x141   :  { %1803 = vst.msk [vmem:[%s3302_s3 + $0x20] sm:$0xf] %vm1794_vm1, %v2134_v28  ;;  %v2135_v20 = vpack.c.bf16 %v1623_v29, %v1623_v29  ;;  %v1547_v31 = vmax.f32 %v3366_v27, %v1511_v16  ;;  %v1512_v32 = vmax.f32 %v1013_v21, %v1371_v19  ;;  %v3372_v62 = vmax.f32 %v2904_v3, %v2906_v4 }
 0x142   :  { %1806 = vst.msk [vmem:[%s3302_s3 + $0x2c] sm:$0xf] %vm1794_vm1, %v2137_v43  ;;  %v1592_v46 = vadd.f32 %v3009_v2, %v1549_v51  ;;  %v1550_v30 = vmax.f32 %v3367_v47, %v1514_v8  ;;  %v3373_v4 = vmax.f32 %v2910_v6, %v2912_v7  ;;  %v3375_v7 = vmax.f32 %v2922_v60, %v2924_v57 }
 0x143   :  { %1804 = vst.msk [vmem:[%s3302_s3 + $0x24] sm:$0xf] %vm1794_vm1, %v2135_v20  ;;  %v1590_v49 = vadd.f32 %v3009_v2, %v1547_v31  ;;  %v1548_v24 = vmax.f32 %v3368_v50, %v1512_v32 }
 0x144   :  { %v1628_v39 = vmax.f32 %v1592_v46, 0.0  ;;  %v1593_v42 = vadd.f32 %v3009_v2, %v1550_v30 }
 0x145   :  { %v1626_v10 = vmax.f32 %v1590_v49, 0.0  ;;  %v1591_v11 = vadd.f32 %v3009_v2, %v1548_v24  ;;  %v2344_v12 = vpop.f32.mrb[52].mxu0  ;;  %v2384_v52 = vpop.f32.mrb[52].mxu1  ;;  %v3374_v24 = vmax.f32 %v2916_v9, %v2918_v63  ;;  %v3376_v9 = vld [vmem:[#allocation2_spill] sm:$0xff] }
 0x146   :  { %v2140_v53 = vpack.c.bf16 %v1628_v39, %v1628_v39  ;;  %v1629_v15 = vmax.f32 %v1593_v42, 0.0  ;;  %v1517_v34 = vmax.f32 %v2344_v12, %v2384_v52  ;;  %v1026_v35 = vpop.f32.mrb[53].mxu0  ;;  %v1384_v22 = vpop.f32.mrb[53].mxu1 }
 0x147   :  { %v2138_v37 = vpack.c.bf16 %v1626_v10, %v1626_v10  ;;  %v1627_v38 = vmax.f32 %v1591_v11, 0.0  ;;  %v1515_v23 = vmax.f32 %v1026_v35, %v1384_v22  ;;  %v2345_v36 = vpop.f32.mrb[54].mxu0  ;;  %v2385_v25 = vpop.f32.mrb[54].mxu1  ;;  %v3377_v11 = vmax.f32 %v2928_v54, %v3376_v9 }
 0x148   :  { %1809 = vst.msk [vmem:[%s3302_s3 + $0x38] sm:$0xf] %vm1794_vm1, %v2140_v53  ;;  %v2141_v55 = vpack.c.bf16 %v1629_v15, %v1629_v15  ;;  %v1553_v26 = vmax.f32 %v3369_v56, %v1517_v34  ;;  %v1518_v13 = vmax.f32 %v2345_v36, %v2385_v25  ;;  %v1029_v14 = vpop.f32.mrb[55].mxu0  ;;  %v1387_v40 = vpop.f32.mrb[55].mxu1 }
 0x149   :  { %1807 = vst.msk [vmem:[%s3302_s3 + $0x30] sm:$0xf] %vm1794_vm1, %v2138_v37  ;;  %v2139_v41 = vpack.c.bf16 %v1627_v38, %v1627_v38  ;;  %v1551_v33 = vmax.f32 %v3370_v18, %v1515_v23  ;;  %v1516_v48 = vmax.f32 %v1029_v14, %v1387_v40  ;;  %v3379_v14 = vld [vmem:[#allocation4_spill] sm:$0xff] }
 0x14a   :  { %1810 = vst.msk [vmem:[%s3302_s3 + $0x3c] sm:$0xf] %vm1794_vm1, %v2141_v55  ;;  %v1596_v58 = vadd.f32 %v3009_v2, %v1553_v26  ;;  %v1554_v5 = vmax.f32 %v3371_v59, %v1518_v13  ;;  %v3378_v13 = vld [vmem:[#allocation3_spill] sm:$0xff]  ;;  %v3381_v59 = vld [vmem:[#allocation5_spill] sm:$0xff] }
 0x14b   :  { %1808 = vst.msk [vmem:[%s3302_s3 + $0x34] sm:$0xf] %vm1794_vm1, %v2139_v41  ;;  %v1594_v61 = vadd.f32 %v3009_v2, %v1551_v33  ;;  %v1552_v28 = vmax.f32 %v3372_v62, %v1516_v48  ;;  %v3380_v40 = vmax.f32 %v3378_v13, %v3379_v14 }
 0x14c   :  { %v1632_v29 = vmax.f32 %v1596_v58, 0.0  ;;  %v1597_v16 = vadd.f32 %v3009_v2, %v1554_v5  ;;  %v3382_v5 = vld [vmem:[#allocation6_spill] sm:$0xff] }
 0x14d   :  { %v1630_v17 = vmax.f32 %v1594_v61, 0.0  ;;  %v1595_v45 = vadd.f32 %v3009_v2, %v1552_v28  ;;  %v2348_v43 = vpop.f32.mrb[56].mxu0  ;;  %v2388_v0 = vpop.f32.mrb[56].mxu1  ;;  %v3383_v61 = vmax.f32 %v3381_v59, %v3382_v5 }
 0x14e   :  { %v2144_v1 = vpack.c.bf16 %v1632_v29, %v1632_v29  ;;  %v1633_v44 = vmax.f32 %v1597_v16, 0.0  ;;  %v1521_v51 = vmax.f32 %v2348_v43, %v2388_v0  ;;  %v1042_v8 = vpop.f32.mrb[57].mxu0  ;;  %v1400_v21 = vpop.f32.mrb[57].mxu1  ;;  %v3384_v16 = vld [vmem:[#allocation7_spill] sm:$0xff] }
 0x14f   :  { %v2142_v19 = vpack.c.bf16 %v1630_v17, %v1630_v17  ;;  %v1631_v20 = vmax.f32 %v1595_v45, 0.0  ;;  %v1519_v27 = vmax.f32 %v1042_v8, %v1400_v21  ;;  %v2349_v31 = vpop.f32.mrb[58].mxu0  ;;  %v2389_v32 = vpop.f32.mrb[58].mxu1  ;;  %v3385_v17 = vld [vmem:[#allocation8_spill] sm:$0xff] }
 0x150   :  { %1813 = vst.msk [vmem:[%s3302_s3 + $0x48] sm:$0xf] %vm1794_vm1, %v2144_v1  ;;  %v2145_v3 = vpack.c.bf16 %v1633_v44, %v1633_v44  ;;  %v1557_v46 = vmax.f32 %v3373_v4, %v1521_v51  ;;  %v1522_v47 = vmax.f32 %v2349_v31, %v2389_v32  ;;  %v1045_v30 = vpop.f32.mrb[59].mxu0  ;;  %v1403_v49 = vpop.f32.mrb[59].mxu1  ;;  %v3386_v45 = vmax.f32 %v3384_v16, %v3385_v17  ;;  %v3387_v1 = vld [vmem:[#allocation9_spill] sm:$0xff]  ;;  %v3388_v44 = vld [vmem:[#allocation10_spill] sm:$0xff] }
 0x151   :  { %1811 = vst.msk [vmem:[%s3302_s3 + $0x40] sm:$0xf] %vm1794_vm1, %v2142_v19  ;;  %v2143_v50 = vpack.c.bf16 %v1631_v20, %v1631_v20  ;;  %v1555_v39 = vmax.f32 %v3374_v24, %v1519_v27  ;;  %v1520_v42 = vmax.f32 %v1045_v30, %v1403_v49  ;;  %v3389_v51 = vmax.f32 %v3387_v1, %v3388_v44 }
 0x152   :  { %1814 = vst.msk [vmem:[%s3302_s3 + $0x4c] sm:$0xf] %vm1794_vm1, %v2145_v3  ;;  %v1600_v6 = vadd.f32 %v3009_v2, %v1557_v46  ;;  %v1558_v10 = vmax.f32 %v3375_v7, %v1522_v47  ;;  %v3390_v7 = vld [vmem:[#allocation11_spill] sm:$0xff] }
 0x153   :  { %1812 = vst.msk [vmem:[%s3302_s3 + $0x44] sm:$0xf] %vm1794_vm1, %v2143_v50  ;;  %v1598_v63 = vadd.f32 %v3009_v2, %v1555_v39  ;;  %v1556_v12 = vmax.f32 %v3377_v11, %v1520_v42 }
 0x154   :  { %v1636_v52 = vmax.f32 %v1600_v6, 0.0  ;;  %v1601_v53 = vadd.f32 %v3009_v2, %v1558_v10  ;;  %v3391_v10 = vld [vmem:[#allocation12_spill] sm:$0xff] }
 0x155   :  { %v1634_v15 = vmax.f32 %v1598_v63, 0.0  ;;  %v1599_v34 = vadd.f32 %v3009_v2, %v1556_v12  ;;  %v2352_v35 = vpop.f32.mrb[60].mxu0  ;;  %v2392_v57 = vpop.f32.mrb[60].mxu1  ;;  %v3392_v63 = vmax.f32 %v3390_v7, %v3391_v10 }
 0x156   :  { %v2148_v60 = vpack.c.bf16 %v1636_v52, %v1636_v52  ;;  %v1637_v22 = vmax.f32 %v1601_v53, 0.0  ;;  %v1525_v37 = vmax.f32 %v2352_v35, %v2392_v57  ;;  %v1058_v38 = vpop.f32.mrb[61].mxu0  ;;  %v1416_v23 = vpop.f32.mrb[61].mxu1 }
 0x157   :  { %v2146_v36 = vpack.c.bf16 %v1634_v15, %v1634_v15  ;;  %v1635_v25 = vmax.f32 %v1599_v34, 0.0  ;;  %v1523_v55 = vmax.f32 %v1058_v38, %v1416_v23  ;;  %v2353_v56 = vpop.f32.mrb[62].mxu0  ;;  %v2393_v26 = vpop.f32.mrb[62].mxu1  ;;  %v3393_v15 = vld [vmem:[#allocation13_spill] sm:$0xff]  ;;  %v3394_v34 = vld [vmem:[#allocation14_spill] sm:$0xff]  ;;  %v3397_v38 = vld [vmem:[#allocation16_spill] sm:$0xff] }
 0x158   :  { %1817 = vst.msk [vmem:[%s3302_s3 + $0x58] sm:$0xf] %vm1794_vm1, %v2148_v60  ;;  %v2149_v54 = vpack.c.bf16 %v1637_v22, %v1637_v22  ;;  %v1561_v41 = vmax.f32 %v3380_v40, %v1525_v37  ;;  %v1526_v18 = vmax.f32 %v2353_v56, %v2393_v26  ;;  %v1061_v33 = vpop.f32.mrb[63].mxu0  ;;  %v1419_v48 = vpop.f32.mrb[63].mxu1  ;;  %v3395_v35 = vmax.f32 %v3393_v15, %v3394_v34  ;;  %v3396_v37 = vld [vmem:[#allocation15_spill] sm:$0xff]  ;;  %v3400_v56 = vld [vmem:[#allocation18_spill] sm:$0xff] }
 0x159   :  { %1815 = vst.msk [vmem:[%s3302_s3 + $0x50] sm:$0xf] %vm1794_vm1, %v2146_v36  ;;  %v2147_v58 = vpack.c.bf16 %v1635_v25, %v1635_v25  ;;  %v1559_v62 = vmax.f32 %v3383_v61, %v1523_v55  ;;  %v1524_v28 = vmax.f32 %v1061_v33, %v1419_v48  ;;  %v3398_v23 = vmax.f32 %v3396_v37, %v3397_v38  ;;  %v3399_v55 = vld [vmem:[#allocation17_spill] sm:$0xff] }
 0x15a   :  { %1818 = vst.msk [vmem:[%s3302_s3 + $0x5c] sm:$0xf] %vm1794_vm1, %v2149_v54  ;;  %v1604_v29 = vadd.f32 %v3009_v2, %v1561_v41  ;;  %v1562_v43 = vmax.f32 %v3386_v45, %v1526_v18  ;;  %v3401_v26 = vmax.f32 %v3399_v55, %v3400_v56 }
 0x15b   :  { %1816 = vst.msk [vmem:[%s3302_s3 + $0x54] sm:$0xf] %vm1794_vm1, %v2147_v58  ;;  %v1602_v0 = vadd.f32 %v3009_v2, %v1559_v62  ;;  %v1560_v8 = vmax.f32 %v3389_v51, %v1524_v28 }
 0x15c   :  { %v1640_v21 = vmax.f32 %v1604_v29, 0.0  ;;  %v1605_v19 = vadd.f32 %v3009_v2, %v1562_v43  ;;  %v3402_v43 = vld [vmem:[#allocation19_spill] sm:$0xff] }
 0x15d   :  { %v1638_v20 = vmax.f32 %v1602_v0, 0.0  ;;  %v1603_v27 = vadd.f32 %v3009_v2, %v1560_v8  ;;  %v2356_v31 = vpop.f32.mrb[64].mxu0  ;;  %v2396_v32 = vpop.f32.mrb[64].mxu1  ;;  %v3403_v0 = vld [vmem:[#allocation20_spill] sm:$0xff] }
 0x15e   :  { %v2152_v3 = vpack.c.bf16 %v1640_v21, %v1640_v21  ;;  %v1641_v4 = vmax.f32 %v1605_v19, 0.0  ;;  %v1529_v46 = vmax.f32 %v2356_v31, %v2396_v32  ;;  %v1074_v47 = vpop.f32.mrb[65].mxu0  ;;  %v1432_v30 = vpop.f32.mrb[65].mxu1  ;;  %v3404_v1 = vmax.f32 %v3402_v43, %v3403_v0 }
 0x15f   :  { %v2150_v49 = vpack.c.bf16 %v1638_v20, %v1638_v20  ;;  %v1639_v50 = vmax.f32 %v1603_v27, 0.0  ;;  %v1527_v24 = vmax.f32 %v1074_v47, %v1432_v30  ;;  %v2357_v39 = vpop.f32.mrb[66].mxu0  ;;  %v2397_v42 = vpop.f32.mrb[66].mxu1  ;;  %v3405_v20 = vld [vmem:[#allocation21_spill] sm:$0xff]  ;;  %v3406_v27 = vld [vmem:[#allocation22_spill] sm:$0xff]  ;;  %v3409_v47 = vld [vmem:[#allocation24_spill] sm:$0xff] }
 0x160   :  { %1821 = vst.msk [vmem:[%s3302_s3 + $0x68] sm:$0xf] %vm1794_vm1, %v2152_v3  ;;  %v2153_v6 = vpack.c.bf16 %v1641_v4, %v1641_v4  ;;  %v1565_v9 = vmax.f32 %v3392_v63, %v1529_v46  ;;  %v1530_v11 = vmax.f32 %v2357_v39, %v2397_v42  ;;  %v1077_v12 = vpop.f32.mrb[67].mxu0  ;;  %v1435_v52 = vpop.f32.mrb[67].mxu1  ;;  %v3407_v31 = vmax.f32 %v3405_v20, %v3406_v27  ;;  %v3408_v46 = vld [vmem:[#allocation23_spill] sm:$0xff]  ;;  %v3412_v39 = vld [vmem:[#allocation26_spill] sm:$0xff] }
 0x161   :  { %1819 = vst.msk [vmem:[%s3302_s3 + $0x60] sm:$0xf] %vm1794_vm1, %v2150_v49  ;;  %v2151_v53 = vpack.c.bf16 %v1639_v50, %v1639_v50  ;;  %v1563_v57 = vmax.f32 %v3395_v35, %v1527_v24  ;;  %v1528_v60 = vmax.f32 %v1077_v12, %v1435_v52  ;;  %v3410_v30 = vmax.f32 %v3408_v46, %v3409_v47  ;;  %v3411_v24 = vld [vmem:[#allocation25_spill] sm:$0xff] }
 0x162   :  { %1822 = vst.msk [vmem:[%s3302_s3 + $0x6c] sm:$0xf] %vm1794_vm1, %v2153_v6  ;;  %v1608_v22 = vadd.f32 %v3009_v2, %v1565_v9  ;;  %v1566_v36 = vmax.f32 %v3398_v23, %v1530_v11  ;;  %v3413_v42 = vmax.f32 %v3411_v24, %v3412_v39 }
 0x163   :  { %1820 = vst.msk [vmem:[%s3302_s3 + $0x64] sm:$0xf] %vm1794_vm1, %v2151_v53  ;;  %v1606_v25 = vadd.f32 %v3009_v2, %v1563_v57  ;;  %v1564_v54 = vmax.f32 %v3401_v26, %v1528_v60 }
 0x164   :  { %v1644_v13 = vmax.f32 %v1608_v22, 0.0  ;;  %v1609_v14 = vadd.f32 %v3009_v2, %v1566_v36 }
 0x165   :  { %v1642_v40 = vmax.f32 %v1606_v25, 0.0  ;;  %v1607_v41 = vadd.f32 %v3009_v2, %v1564_v54  ;;  %v2360_v18 = vpop.f32.mrb[68].mxu0  ;;  %v2400_v33 = vpop.f32.mrb[68].mxu1 }
 0x166   :  { %v2156_v48 = vpack.c.bf16 %v1644_v13, %v1644_v13  ;;  %v1645_v58 = vmax.f32 %v1609_v14, 0.0  ;;  %v1533_v59 = vmax.f32 %v2360_v18, %v2400_v33  ;;  %v1090_v5 = vpop.f32.mrb[69].mxu0  ;;  %v1448_v61 = vpop.f32.mrb[69].mxu1 }
 0x167   :  { %v2154_v62 = vpack.c.bf16 %v1642_v40, %v1642_v40  ;;  %v1643_v28 = vmax.f32 %v1607_v41, 0.0  ;;  %v1531_v29 = vmax.f32 %v1090_v5, %v1448_v61  ;;  %v2361_v16 = vpop.f32.mrb[70].mxu0  ;;  %v2401_v17 = vpop.f32.mrb[70].mxu1 }
 0x168   :  { %1825 = vst.msk [vmem:[%s3302_s3 + $0x78] sm:$0xf] %vm1794_vm1, %v2156_v48  ;;  %v2157_v45 = vpack.c.bf16 %v1645_v58, %v1645_v58  ;;  %v1569_v44 = vmax.f32 %v3404_v1, %v1533_v59  ;;  %v1534_v51 = vmax.f32 %v2361_v16, %v2401_v17  ;;  %v1093_v8 = vpop.f32.mrb[71].mxu0  ;;  %v1451_v21 = vpop.f32.mrb[71].mxu1 }
 0x169   :  { %1823 = vst.msk [vmem:[%s3302_s3 + $0x70] sm:$0xf] %vm1794_vm1, %v2154_v62  ;;  %v2155_v19 = vpack.c.bf16 %v1643_v28, %v1643_v28  ;;  %v1567_v32 = vmax.f32 %v3407_v31, %v1531_v29  ;;  %v1532_v3 = vmax.f32 %v1093_v8, %v1451_v21 }
 0x16a   :  { %1826 = vst.msk [vmem:[%s3302_s3 + $0x7c] sm:$0xf] %vm1794_vm1, %v2157_v45  ;;  %v1612_v4 = vadd.f32 %v3009_v2, %v1569_v44  ;;  %v1570_v49 = vmax.f32 %v3410_v30, %v1534_v51 }
 0x16b   :  { %1824 = vst.msk [vmem:[%s3302_s3 + $0x74] sm:$0xf] %vm1794_vm1, %v2155_v19  ;;  %v1610_v50 = vadd.f32 %v3009_v2, %v1567_v32  ;;  %v1568_v6 = vmax.f32 %v3413_v42, %v1532_v3 }
 0x16c   :  { %v1648_v7 = vmax.f32 %v1612_v4, 0.0  ;;  %v1613_v10 = vadd.f32 %v3009_v2, %v1570_v49 }
 0x16d   :  { %v1646_v63 = vmax.f32 %v1610_v50, 0.0  ;;  %v1611_v9 = vadd.f32 %v3009_v2, %v1568_v6 }
 0x16e   :  { %v2160_v11 = vpack.c.bf16 %v1648_v7, %v1648_v7  ;;  %v1649_v12 = vmax.f32 %v1613_v10, 0.0 }
 0x16f   :  { %v2158_v52 = vpack.c.bf16 %v1646_v63, %v1646_v63  ;;  %v1647_v53 = vmax.f32 %v1611_v9, 0.0 }
 0x170   :  { %1829 = vst.msk [vmem:[%s3302_s3 + $0x88] sm:$0xf] %vm1794_vm1, %v2160_v11  ;;  %v2161_v15 = vpack.c.bf16 %v1649_v12, %v1649_v12 }
 0x171   :  { %1827 = vst.msk [vmem:[%s3302_s3 + $0x80] sm:$0xf] %vm1794_vm1, %v2158_v52  ;;  %v2159_v34 = vpack.c.bf16 %v1647_v53, %v1647_v53 }
 0x172   :  { %1830 = vst.msk [vmem:[%s3302_s3 + $0x8c] sm:$0xf] %vm1794_vm1, %v2161_v15 }
 0x173   :  { %1828 = vst.msk [vmem:[%s3302_s3 + $0x84] sm:$0xf] %vm1794_vm1, %v2159_v34 }

// kernel: net_forward.4
= control target key start
LH: loop header
LB: loop body
LE: loop exit
PB: predicated region body
PF: predicated region fallthrough
CT: control target
= control target key end

     0   :  { %vm481_vm0 = vcmask 158720   ;;  %s854_s1 = inlined_call_operand.vmem [shape: bf16[256,20], index: 1, kind: input, shape index: {}]   ;;  %s855_s0 = inlined_call_operand.vmem [shape: bf16[4,32,256], index: 0, kind: input, shape index: {}]   ;;  %s856_s2 = inlined_call_operand.vmem [shape: f32[1,20], index: 2, kind: input, shape index: {}]   ;;  %s857_s3 = inlined_call_operand.vmem [shape: bf16[32,20], index: 3, kind: output, shape index: {}]  }
   0x1   :  { %v655_v0 = vld [vmem:[%s854_s1 + $0x40] sm:$0xff]   ;;  %v657_v2 = vld [vmem:[%s854_s1 + $0x48] sm:$0xff]   ;;  %v659_v4 = vld [vmem:[%s854_s1 + $0x50] sm:$0xff]  }
   0x2   :  { %v656_v1 = vld [vmem:[%s854_s1] sm:$0xff]   ;;  %543 = vmatprep.subr.bf16.mxu0 %v655_v0  ;;  %571 = vmatprep.subr.bf16.mxu1 %v655_v0  ;;  %v658_v3 = vld [vmem:[%s854_s1 + $0x8] sm:$0xff]   ;;  %v733_v5 = vld [vmem:[%s854_s1 + $0x10] sm:$0xff]  }
   0x3   :  { %544 = vmatpush3.bf16.msra.mxu0 %v656_v1  ;;  %572 = vmatpush3.bf16.msra.mxu1 %v656_v1  ;;  %v738_v6 = vld [vmem:[%s854_s1 + $0x58] sm:$0xff]   ;;  %v752_v8 = vld [vmem:[%s854_s1 + $0x60] sm:$0xff]   ;;  %v665_v10 = vld [vmem:[%s854_s1 + $0x68] sm:$0xff]  }
   0x4   :  { %545 = vmatprep.subr.bf16.mxu0 %v657_v2  ;;  %573 = vmatprep.subr.bf16.mxu1 %v657_v2  ;;  %v745_v7 = vld [vmem:[%s854_s1 + $0x18] sm:$0xff]   ;;  %v664_v9 = vld [vmem:[%s854_s1 + $0x20] sm:$0xff]   ;;  %v666_v13 = vld [vmem:[%s854_s1 + $0x28] sm:$0xff]  }
   0x5   :  { %v673_v11 = vld [vmem:[%s855_s0 + $0x4] ss:$8 sps:$4 sm:$0xff]   ;;  %v667_v14 = vld [vmem:[%s854_s1 + $0x70] sm:$0xff]   ;;  %v669_v16 = vld [vmem:[%s854_s1 + $0x78] sm:$0xff]  }
   0x6   :  { %v676_v12 = vld [vmem:[%s855_s0 + $0x24] ss:$8 sps:$4 sm:$0xff]   ;;  %199 = vmatprep.mubr.bf16.mxu0 %v673_v11  ;;  %v668_v15 = vld [vmem:[%s854_s1 + $0x30] sm:$0xff]   ;;  %v670_v17 = vld [vmem:[%s854_s1 + $0x38] sm:$0xff]  }
   0x7   :  { %546 = vmatpush3.bf16.msra.mxu0 %v658_v3  ;;  %574 = vmatpush3.bf16.msra.mxu1 %v658_v3  ;;  %v671_v18 = vld [vmem:[%s855_s0] ss:$8 sps:$4 sm:$0xff]   ;;  %v677_v20 = vld [vmem:[%s855_s0 + $0x14] ss:$8 sps:$4 sm:$0xff]   ;;  %v681_v22 = vld [vmem:[%s855_s0 + $0x10] ss:$8 sps:$4 sm:$0xff]  }
   0x8   :  { %547 = vmatprep.subr.bf16.mxu0 %v659_v4  ;;  %575 = vmatprep.subr.bf16.mxu1 %v659_v4  ;;  %v674_v19 = vld [vmem:[%s855_s0 + $0x20] ss:$8 sps:$4 sm:$0xff]   ;;  %v679_v21 = vld [vmem:[%s855_s0 + $0x34] ss:$8 sps:$4 sm:$0xff]   ;;  %v682_v23 = vld [vmem:[%s855_s0 + $0x30] ss:$8 sps:$4 sm:$0xff]  }
   0x9   :  { %273 = vmatprep.mubr.bf16.mxu1 %v676_v12  ;;  %v685_v24 = vld [vmem:[%s855_s0 + $0x44] ss:$8 sps:$4 sm:$0xff]   ;;  %v683_v26 = vld [vmem:[%s855_s0 + $0x40] ss:$8 sps:$4 sm:$0xff]   ;;  %v689_v28 = vld [vmem:[%s855_s0 + $0x54] ss:$8 sps:$4 sm:$0xff]  }
   0xa   :  { %v688_v25 = vld [vmem:[%s855_s0 + $0x64] ss:$8 sps:$4 sm:$0xff]   ;;  %v686_v27 = vld [vmem:[%s855_s0 + $0x60] ss:$8 sps:$4 sm:$0xff]   ;;  %v691_v29 = vld [vmem:[%s855_s0 + $0x74] ss:$8 sps:$4 sm:$0xff]  }
   0xb   :  { %548 = vmatpush3.bf16.msra.mxu0 %v733_v5  ;;  %576 = vmatpush3.bf16.msra.mxu1 %v733_v5  ;;  %v693_v30 = vld [vmem:[%s855_s0 + $0x50] ss:$8 sps:$4 sm:$0xff]  }
   0xc   :  { %549 = vmatprep.subr.bf16.mxu0 %v738_v6  ;;  %577 = vmatprep.subr.bf16.mxu1 %v738_v6  ;;  %v694_v31 = vld [vmem:[%s855_s0 + $0x70] ss:$8 sps:$4 sm:$0xff]  }
   0xf   :  { %550 = vmatpush3.bf16.msra.mxu0 %v745_v7  ;;  %578 = vmatpush3.bf16.msra.mxu1 %v745_v7 }
  0x10   :  { %551 = vmatprep.subr.bf16.mxu0 %v752_v8  ;;  %579 = vmatprep.subr.bf16.mxu1 %v752_v8 }
  0x13   :  { %552 = vmatpush3.bf16.msra.mxu0 %v664_v9  ;;  %580 = vmatpush3.bf16.msra.mxu1 %v664_v9 }
  0x14   :  { %553 = vmatprep.subr.bf16.mxu0 %v665_v10  ;;  %581 = vmatprep.subr.bf16.mxu1 %v665_v10 }
  0x17   :  { %554 = vmatpush3.bf16.msra.mxu0 %v666_v13  ;;  %582 = vmatpush3.bf16.msra.mxu1 %v666_v13 }
  0x18   :  { %555 = vmatprep.subr.bf16.mxu0 %v667_v14  ;;  %583 = vmatprep.subr.bf16.mxu1 %v667_v14 }
  0x1b   :  { %556 = vmatpush3.bf16.msra.mxu0 %v668_v15  ;;  %584 = vmatpush3.bf16.msra.mxu1 %v668_v15 }
  0x1c   :  { %557 = vmatprep.subr.bf16.mxu0 %v669_v16  ;;  %585 = vmatprep.subr.bf16.mxu1 %v669_v16 }
  0x1f   :  { %558 = vmatpush3.bf16.msra.mxu0 %v670_v17  ;;  %586 = vmatpush3.bf16.msra.mxu1 %v670_v17 }
  0x20   :  { %599 = vmatprep.subr.bf16.mxu0 %v655_v0  ;;  %627 = vmatprep.subr.bf16.mxu1 %v655_v0 }
  0x22   :  { %200 = vmatmul.mubr.bf16.vlgmr.msra.gmra.mrb[0].mxu0 %v671_v18  ;;  %274 = vmatmul.mubr.bf16.vlgmr.msra.gmra.mrb[0].mxu1 %v674_v19 }
  0x23   :  { %600 = vmatpush3.bf16.msra.mxu0 %v656_v1  ;;  %628 = vmatpush3.bf16.msra.mxu1 %v656_v1 }
  0x24   :  { %601 = vmatprep.subr.bf16.mxu0 %v657_v2  ;;  %629 = vmatprep.subr.bf16.mxu1 %v657_v2 }
  0x25   :  { %207 = vmatprep.mubr.bf16.mxu0 %v677_v20  ;;  %281 = vmatprep.mubr.bf16.mxu1 %v679_v21 }
  0x27   :  { %602 = vmatpush3.bf16.msra.mxu0 %v658_v3  ;;  %630 = vmatpush3.bf16.msra.mxu1 %v658_v3 }
  0x28   :  { %603 = vmatprep.subr.bf16.mxu0 %v659_v4  ;;  %631 = vmatprep.subr.bf16.mxu1 %v659_v4 }
  0x2a   :  { %208 = vmatmul.mubr.bf16.gmra.mrb[4].mxu0 %v681_v22  ;;  %282 = vmatmul.mubr.bf16.gmra.mrb[4].mxu1 %v682_v23 }
  0x2b   :  { %604 = vmatpush3.bf16.msra.mxu0 %v733_v5  ;;  %632 = vmatpush3.bf16.msra.mxu1 %v733_v5 }
  0x2c   :  { %605 = vmatprep.subr.bf16.mxu0 %v738_v6  ;;  %633 = vmatprep.subr.bf16.mxu1 %v738_v6 }
  0x2d   :  { %347 = vmatprep.mubr.bf16.mxu0 %v685_v24  ;;  %421 = vmatprep.mubr.bf16.mxu1 %v688_v25 }
  0x2f   :  { %606 = vmatpush3.bf16.msra.mxu0 %v745_v7  ;;  %634 = vmatpush3.bf16.msra.mxu1 %v745_v7 }
  0x30   :  { %607 = vmatprep.subr.bf16.mxu0 %v752_v8  ;;  %635 = vmatprep.subr.bf16.mxu1 %v752_v8 }
  0x33   :  { %608 = vmatpush3.bf16.msra.mxu0 %v664_v9  ;;  %636 = vmatpush3.bf16.msra.mxu1 %v664_v9  ;;  %v534_v9 = vld [vmem:[%s856_s2] ss:$0 sm:$0xff] }
  0x34   :  { %609 = vmatprep.subr.bf16.mxu0 %v665_v10  ;;  %637 = vmatprep.subr.bf16.mxu1 %v665_v10 }
  0x37   :  { %610 = vmatpush3.bf16.msra.mxu0 %v666_v13  ;;  %638 = vmatpush3.bf16.msra.mxu1 %v666_v13 }
  0x38   :  { %611 = vmatprep.subr.bf16.mxu0 %v667_v14  ;;  %639 = vmatprep.subr.bf16.mxu1 %v667_v14 }
  0x3b   :  { %612 = vmatpush3.bf16.msra.mxu0 %v668_v15  ;;  %640 = vmatpush3.bf16.msra.mxu1 %v668_v15 }
  0x3c   :  { %613 = vmatprep.subr.bf16.mxu0 %v669_v16  ;;  %641 = vmatprep.subr.bf16.mxu1 %v669_v16 }
  0x3f   :  { %614 = vmatpush3.bf16.msra.mxu0 %v670_v17  ;;  %642 = vmatpush3.bf16.msra.mxu1 %v670_v17 }
  0x42   :  { %348 = vmatmul.mubr.bf16.vlgmr.msra.gmra.mrb[8].mxu0 %v683_v26  ;;  %422 = vmatmul.mubr.bf16.vlgmr.msra.gmra.mrb[8].mxu1 %v686_v27 }
  0x43   :  { %355 = vmatprep.mubr.bf16.mxu0 %v689_v28  ;;  %429 = vmatprep.mubr.bf16.mxu1 %v691_v29 }
  0x4a   :  { %356 = vmatmul.mubr.bf16.gmra.mrb[12].mxu0 %v693_v30  ;;  %430 = vmatmul.mubr.bf16.gmra.mrb[12].mxu1 %v694_v31 }
  0xf5   :  { %v559_v32 = vpop.f32.mrb[0].mxu0  ;;  %v587_v33 = vpop.f32.mrb[0].mxu1 }
  0xf6   :  { %v560_v34 = vpop.f32.mrb[1].mxu0  ;;  %v588_v35 = vpop.f32.mrb[1].mxu1 }
  0xf7   :  { %v561_v36 = vadd.f32 %v560_v34, %v559_v32  ;;  %v589_v37 = vadd.f32 %v588_v35, %v587_v33  ;;  %v562_v38 = vpop.f32.mrb[2].mxu0  ;;  %v590_v39 = vpop.f32.mrb[2].mxu1 }
  0xf8   :  { %v563_v40 = vpop.f32.mrb[3].mxu0  ;;  %v591_v41 = vpop.f32.mrb[3].mxu1 }
  0xf9   :  { %v438_v42 = vmax.f32 %v561_v36, %v589_v37  ;;  %v564_v43 = vadd.f32 %v563_v40, %v562_v38  ;;  %v592_v44 = vadd.f32 %v591_v41, %v590_v39 }
  0xfb   :  { %v439_v45 = vmax.f32 %v564_v43, %v592_v44 }
  0xfd   :  { %v565_v46 = vpop.f32.mrb[4].mxu0  ;;  %v593_v47 = vpop.f32.mrb[4].mxu1 }
  0xfe   :  { %v566_v48 = vpop.f32.mrb[5].mxu0  ;;  %v594_v49 = vpop.f32.mrb[5].mxu1 }
  0xff   :  { %v567_v50 = vadd.f32 %v566_v48, %v565_v46  ;;  %v595_v51 = vadd.f32 %v594_v49, %v593_v47  ;;  %v568_v52 = vpop.f32.mrb[6].mxu0  ;;  %v596_v53 = vpop.f32.mrb[6].mxu1 }
 0x100   :  { %v569_v54 = vpop.f32.mrb[7].mxu0  ;;  %v597_v55 = vpop.f32.mrb[7].mxu1 }
 0x101   :  { %v440_v56 = vmax.f32 %v567_v50, %v595_v51  ;;  %v570_v57 = vadd.f32 %v569_v54, %v568_v52  ;;  %v598_v58 = vadd.f32 %v597_v55, %v596_v53 }
 0x103   :  { %v441_v59 = vmax.f32 %v570_v57, %v598_v58 }
 0x115   :  { %v615_v60 = vpop.f32.mrb[8].mxu0  ;;  %v643_v61 = vpop.f32.mrb[8].mxu1 }
 0x116   :  { %v616_v62 = vpop.f32.mrb[9].mxu0  ;;  %v644_v63 = vpop.f32.mrb[9].mxu1 }
 0x117   :  { %v617_v0 = vadd.f32 %v616_v62, %v615_v60  ;;  %v645_v1 = vadd.f32 %v644_v63, %v643_v61  ;;  %v618_v2 = vpop.f32.mrb[10].mxu0  ;;  %v646_v3 = vpop.f32.mrb[10].mxu1 }
 0x118   :  { %v619_v4 = vpop.f32.mrb[11].mxu0  ;;  %v647_v5 = vpop.f32.mrb[11].mxu1 }
 0x119   :  { %v442_v6 = vmax.f32 %v617_v0, %v645_v1  ;;  %v620_v7 = vadd.f32 %v619_v4, %v618_v2  ;;  %v648_v8 = vadd.f32 %v647_v5, %v646_v3 }
 0x11b   :  { %v446_v10 = vmax.f32 %v438_v42, %v442_v6  ;;  %v443_v11 = vmax.f32 %v620_v7, %v648_v8 }
 0x11d   :  { %v457_v12 = vadd.f32 %v534_v9, %v446_v10  ;;  %v447_v13 = vmax.f32 %v439_v45, %v443_v11  ;;  %v621_v14 = vpop.f32.mrb[12].mxu0  ;;  %v649_v15 = vpop.f32.mrb[12].mxu1 }
 0x11e   :  { %v622_v16 = vpop.f32.mrb[13].mxu0  ;;  %v650_v17 = vpop.f32.mrb[13].mxu1 }
 0x11f   :  { %v461_v18 = vmax.f32 %v457_v12, 0.0  ;;  %v458_v19 = vadd.f32 %v534_v9, %v447_v13  ;;  %v623_v20 = vadd.f32 %v622_v16, %v621_v14  ;;  %v651_v21 = vadd.f32 %v650_v17, %v649_v15  ;;  %v624_v22 = vpop.f32.mrb[14].mxu0  ;;  %v652_v23 = vpop.f32.mrb[14].mxu1 }
 0x120   :  { %v625_v24 = vpop.f32.mrb[15].mxu0  ;;  %v653_v25 = vpop.f32.mrb[15].mxu1 }
 0x121   :  { %v539_v26 = vpack.c.bf16 %v461_v18, %v461_v18  ;;  %v462_v27 = vmax.f32 %v458_v19, 0.0  ;;  %v444_v28 = vmax.f32 %v623_v20, %v651_v21  ;;  %v626_v29 = vadd.f32 %v625_v24, %v624_v22 }
 0x122   :  { %v654_v30 = vadd.f32 %v653_v25, %v652_v23 }
 0x123   :  { %482 = vst.msk [vmem:[%s857_s3] sm:$0xf] %vm481_vm0, %v539_v26  ;;  %v540_v31 = vpack.c.bf16 %v462_v27, %v462_v27  ;;  %v448_v32 = vmax.f32 %v440_v56, %v444_v28 }
 0x124   :  { %v445_v33 = vmax.f32 %v626_v29, %v654_v30 }
 0x125   :  { %483 = vst.msk [vmem:[%s857_s3 + $0x4] sm:$0xf] %vm481_vm0, %v540_v31  ;;  %v459_v34 = vadd.f32 %v534_v9, %v448_v32 }
 0x126   :  { %v449_v35 = vmax.f32 %v441_v59, %v445_v33 }
 0x127   :  { %v463_v36 = vmax.f32 %v459_v34, 0.0 }
 0x128   :  { %v460_v37 = vadd.f32 %v534_v9, %v449_v35 }
 0x129   :  { %v541_v38 = vpack.c.bf16 %v463_v36, %v463_v36 }
 0x12a   :  { %v464_v39 = vmax.f32 %v460_v37, 0.0 }
 0x12b   :  { %484 = vst.msk [vmem:[%s857_s3 + $0x8] sm:$0xf] %vm481_vm0, %v541_v38 }
 0x12c   :  { %v542_v40 = vpack.c.bf16 %v464_v39, %v464_v39 }
 0x12e   :  { %485 = vst.msk [vmem:[%s857_s3 + $0xc] sm:$0xf] %vm481_vm0, %v542_v40 }

// kernel: net_forward.5
= control target key start
LH: loop header
LB: loop body
LE: loop exit
PB: predicated region body
PF: predicated region fallthrough
CT: control target
= control target key end

     0   :  { %v507_v1 = vmov 0.0   ;;  %vm508_vm0 = vmmov 0   ;;  %vm200_vm1 = vcmask 523264   ;;  %vm325_vm2 = vcmask 1040384   ;;  %s641_s1 = inlined_call_operand.vmem [shape: bf16[320,50], index: 1, kind: input, shape index: {}]   ;;  %s642_s0 = inlined_call_operand.vmem [shape: bf16[8,320], index: 0, kind: input, shape index: {}]   ;;  %s643_s3 = inlined_call_operand.vmem [shape: bf16[50,10], index: 3, kind: input, shape index: {}]   ;;  %s644_s2 = inlined_call_operand.vmem [shape: f32[1,50], index: 2, kind: input, shape index: {}]   ;;  %s645_s4 = inlined_call_operand.vmem [shape: f32[1,10], index: 4, kind: input, shape index: {}]   ;;  %s646_s5 = inlined_call_operand.vmem [shape: f32[8,10], index: 5, kind: output, shape index: {}]  }
   0x1   :  { %v476_v0 = vld [vmem:[%s641_s1 + $0x40] sm:$0xff]   ;;  %450 = vmatprep.subr.bf16.mxu1 %v507_v1  ;;  %458 = vmatprep.mubr.msk.bf16.mxu1 %vm508_vm0, %v507_v1  ;;  %v478_v3 = vld [vmem:[%s641_s1 + $0x48] sm:$0xff]   ;;  %v480_v5 = vld [vmem:[%s641_s1 + $0x50] sm:$0xff]   ;;  %vm321_vm3 = vcmask 408576   ;;  %vm369_vm4 = vcmask 80896  }
   0x2   :  { %v477_v2 = vld [vmem:[%s641_s1] sm:$0xff]   ;;  %418 = vmatprep.subr.bf16.mxu0 %v476_v0  ;;  %v479_v4 = vld [vmem:[%s641_s1 + $0x8] sm:$0xff]   ;;  %v481_v6 = vld [vmem:[%s641_s1 + $0x10] sm:$0xff]  }
   0x3   :  { %419 = vmatpush3.bf16.msra.mxu0 %v477_v2  ;;  %v482_v7 = vld [vmem:[%s641_s1 + $0x58] sm:$0xff]   ;;  %v486_v8 = vld [vmem:[%s641_s1 + $0x80] sm:$0xff]   ;;  %v489_v11 = vld [vmem:[%s641_s1 + $0x88] sm:$0xff]  }
   0x4   :  { %420 = vmatprep.subr.bf16.mxu0 %v478_v3  ;;  %v483_v9 = vld [vmem:[%s641_s1 + $0x18] sm:$0xff]   ;;  %v484_v10 = vld [vmem:[%s641_s1 + $0x60] sm:$0xff]   ;;  %451 = vmatpush3.bf16.msra.mxu1 %v486_v8  ;;  %v487_v13 = vld [vmem:[%s641_s1 + $0x68] sm:$0xff]  }
   0x5   :  { %452 = vmatprep.subr.bf16.mxu1 %v507_v1  ;;  %v485_v12 = vld [vmem:[%s641_s1 + $0x20] sm:$0xff]   ;;  %v492_v14 = vld [vmem:[%s641_s1 + $0x90] sm:$0xff]   ;;  %v488_v15 = vld [vmem:[%s641_s1 + $0x28] sm:$0xff]  }
   0x6   :  { %v490_v16 = vld [vmem:[%s641_s1 + $0x70] sm:$0xff]   ;;  %v21_v17 = vld [vmem:[%s642_s0] sm:$0xff]  ;;  %v498_v19 = vld [vmem:[%s641_s1 + $0x98] sm:$0xff]  }
   0x7   :  { %421 = vmatpush3.bf16.msra.mxu0 %v479_v4  ;;  %v389_v18 = vcombine.high %v21_v17, %v21_v17  ;;  %v491_v20 = vld [vmem:[%s641_s1 + $0x30] sm:$0xff]   ;;  %v497_v21 = vld [vmem:[%s642_s0 + $0x8] ss:$0 sps:$4 sm:$0xff]   ;;  %v493_v22 = vld [vmem:[%s641_s1 + $0x78] sm:$0xff]   ;;  %v388_v25 = vcombine.low %v21_v17, %v21_v17 }
   0x8   :  { %422 = vmatprep.subr.bf16.mxu0 %v480_v5  ;;  %453 = vmatpush3.bf16.msra.mxu1 %v489_v11  ;;  %v499_v23 = vld [vmem:[%s643_s3] sm:$0xff]   ;;  %v494_v24 = vld [vmem:[%s641_s1 + $0x38] sm:$0xff]   ;;  %v500_v26 = vld [vmem:[%s643_s3 + $0x8] sm:$0xff]  }
   0x9   :  { %454 = vmatprep.subr.bf16.mxu1 %v507_v1  ;;  %236 = vmatprep.mubr.bf16.mxu0 %v389_v18  ;;  %v501_v27 = vld [vmem:[%s643_s3 + $0x10] sm:$0xff]   ;;  %v502_v28 = vld [vmem:[%s643_s3 + $0x18] ss:$0 sps:$4 sm:$0x11]   ;;  %v387_v36 = vld [vmem:[%s644_s2] ss:$0 sm:$0xff] }
   0xa   :  { %v327_v29 = vsel %vm325_vm2, %v502_v28, 0  ;;  %v412_v44 = vld [vmem:[%s645_s4] ss:$0 sm:$0xff] }
   0xb   :  { %423 = vmatpush3.bf16.msra.mxu0 %v481_v6 }
   0xc   :  { %424 = vmatprep.subr.bf16.mxu0 %v482_v7  ;;  %455 = vmatpush3.bf16.msra.mxu1 %v492_v14 }
   0xd   :  { %456 = vmatprep.subr.bf16.mxu1 %v507_v1 }
   0xf   :  { %425 = vmatpush3.bf16.msra.mxu0 %v483_v9 }
  0x10   :  { %426 = vmatprep.subr.bf16.mxu0 %v484_v10  ;;  %457 = vmatpush3.bf16.msra.mxu1 %v498_v19 }
  0x11   :  { %462 = vmatprep.subr.bf16.mxu1 %v507_v1 }
  0x13   :  { %427 = vmatpush3.bf16.msra.mxu0 %v485_v12  ;;  %459 = vmatmul.mubr.msk.bf16.vlgmr.msra.gmra.mrb[0].mxu1 %vm200_vm1, %v497_v21 }
  0x14   :  { %428 = vmatprep.subr.bf16.mxu0 %v487_v13  ;;  %463 = vmatpush3.bf16.msra.mxu1 %v499_v23 }
  0x15   :  { %464 = vmatprep.subr.bf16.mxu1 %v507_v1  ;;  %470 = vmatprep.mubr.msk.bf16.mxu1 %vm508_vm0, %v507_v1 }
  0x17   :  { %429 = vmatpush3.bf16.msra.mxu0 %v488_v15 }
  0x18   :  { %430 = vmatprep.subr.bf16.mxu0 %v490_v16  ;;  %465 = vmatpush3.bf16.msra.mxu1 %v500_v26 }
  0x19   :  { %466 = vmatprep.subr.bf16.mxu1 %v507_v1 }
  0x1b   :  { %431 = vmatpush3.bf16.msra.mxu0 %v491_v20 }
  0x1c   :  { %432 = vmatprep.subr.bf16.mxu0 %v493_v22  ;;  %467 = vmatpush3.bf16.msra.mxu1 %v501_v27 }
  0x1d   :  { %468 = vmatprep.subr.bf16.mxu1 %v507_v1 }
  0x1f   :  { %433 = vmatpush3.bf16.msra.mxu0 %v494_v24 }
  0x20   :  { %469 = vmatpush3.bf16.msra.mxu1 %v327_v29 }
  0x22   :  { %237 = vmatmul.mubr.bf16.vlgmr.msra.gmra.mrb[0].mxu0 %v388_v25 }
  0xe6   :  { %v278_v30 = vpop.f32.mrb[0].mxu1 }
  0xe7   :  { %v460_v31 = vpop.f32.mrb[1].mxu1 }
  0xe8   :  { %v281_v32 = vpop.f32.mrb[2].mxu1 }
  0xe9   :  { %v461_v33 = vpop.f32.mrb[3].mxu1 }
  0xf5   :  { %v434_v34 = vpop.f32.mrb[0].mxu0 }
  0xf6   :  { %v435_v35 = vpop.f32.mrb[1].mxu0 }
  0xf7   :  { %v436_v37 = vadd.f32 %v435_v35, %v434_v34  ;;  %v437_v38 = vpop.f32.mrb[2].mxu0 }
  0xf8   :  { %v438_v39 = vpop.f32.mrb[3].mxu0 }
  0xf9   :  { %v239_v40 = vadd.f32 %v436_v37, %v387_v36 }
  0xfb   :  { %v279_v41 = vadd.f32 %v278_v30, %v239_v40 }
  0xfd   :  { %v284_v42 = vmax.f32 %v279_v41, 0.0 }
  0xff   :  { %v285_v43 = vpack.c.bf16 %v284_v42, %v284_v42 }
 0x101   :  { %471 = vmatmul.mubr.msk.bf16.vlgmr.msra.gmra.mrb[4].mxu1 %vm321_vm3, %v285_v43 }
 0x1d4   :  { %v363_v45 = vpop.f32.mrb[4].mxu1 }
 0x1d5   :  { %v364_v46 = vadd.f32 %v412_v44, %v363_v45  ;;  %v472_v47 = vpop.f32.mrb[5].mxu1 }
 0x1d6   :  { %v366_v48 = vpop.f32.mrb[6].mxu1 }
 0x1d7   :  { %v473_v49 = vpop.f32.mrb[7].mxu1  ;;  %v370_v50 = vsel %vm369_vm4, %v364_v46, -inf }
 0x1d8   :  { %371 = vmax.xlane.f32.xlu0 %v370_v50 }
 0x265   :  { %v372_v51 = vpop.xlane.xlu0 %371 }
 0x266   :  { %v373_v52 = vsub.f32 %v364_v46, %v372_v51 }
 0x268   :  { %v374_v53 = vmul.f32 1.442695, %v373_v52 }
 0x26a   :  { %503 = vpow2.f32 %v374_v53 }
 0x274   :  { %v504_v54 = vpop.eup %503 }
 0x275   :  { %v376_v55 = vsel %vm369_vm4, %v504_v54, 0.0 }
 0x276   :  { %377 = vadd.xlane.f32.xlu0 %v376_v55 }
 0x303   :  { %v378_v56 = vpop.xlane.xlu0 %377 }
 0x304   :  { %505 = vlog2.f32 %v378_v56 }
 0x30e   :  { %v506_v57 = vpop.eup %505 }
 0x30f   :  { %v380_v58 = vmul.f32 0.6931472, %v506_v57 }
 0x311   :  { %v381_v59 = vsub.f32 %v373_v52, %v380_v58 }
 0x313   :  { %382 = vst.msk [vmem:[%s646_s5] sm:$0xff] %vm369_vm4, %v381_v59 }

</bundles_post_ra>
